<compile_context>
chip_gen: v7x
topology: tpu7x:2x2x1
jax: 0.10.0
libtpu: 0.0.40
codegen_flags: <defaults>
</compile_context>

<pallas_src>
import functools

import jax
import jax.numpy as jnp
from jax.experimental import pallas as pl
from jax.experimental.pallas import tpu as pltpu


def _round_up(x, m):
    return (x + m - 1) // m * m


def _choose_row_tile(H, W, max_rows):
    """Largest divisor TH of H with TH*W <= max_rows and TH*W a sublane multiple."""
    best = None
    for th in range(1, H + 1):
        if H % th == 0 and th * W <= max_rows and (th * W) % 8 == 0:
            best = th
    return best if best is not None else H


# ----------------------------------------------------------------------------
# Shared conv body: 3x3 conv over TH output rows as 9 accumulating MXU matmuls.
# ----------------------------------------------------------------------------
def _conv_rows(x_ref, w_ref, row0, *, TH, W, Cin):
    # x_ref : (1, H+2, W+2, Cin)  zero-padded sample (halo = 1), VMEM resident
    # w_ref : (9, Cin, Co)        one (Cin, Co) weight slab per 3x3 tap
    acc = None
    for dh in range(3):
        for dw in range(3):
            t = dh * 3 + dw
            tap = x_ref[0, pl.ds(row0 + dh, TH), dw:dw + W, :]       # (TH, W, Cin)
            part = jnp.dot(tap.reshape(TH * W, Cin), w_ref[t],
                           preferred_element_type=jnp.float32)       # (TH*W, Co)
            acc = part if acc is None else acc + part
    return acc


# ----------------------------------------------------------------------------
# Pass 1: per-row-tile BN partial sums (no conv output ever written to HBM)
# ----------------------------------------------------------------------------
def stats_kernel(x_ref, w_ref, ssum_ref, ssq_ref, *, TH, W, Cin):
    row0 = pl.program_id(1) * TH
    acc = _conv_rows(x_ref, w_ref, row0, TH=TH, W=W, Cin=Cin)        # (TH*W, 4*Cout)
    ssum_ref[0] = jnp.sum(acc, axis=0, keepdims=True)
    ssq_ref[0] = jnp.sum(acc * acc, axis=0, keepdims=True)


# ----------------------------------------------------------------------------
# Pass 2: conv recompute with BN scale + branch-sum folded into weights, + bias
# ----------------------------------------------------------------------------
def out_kernel(x_ref, w_ref, b_ref, o_ref, *, TH, W, Cin):
    row0 = pl.program_id(1) * TH
    acc = _conv_rows(x_ref, w_ref, row0, TH=TH, W=W, Cin=Cin)        # (TH*W, Cout_p)
    o_ref[0] = acc + b_ref[...]


# ----------------------------------------------------------------------------
# Host-side weight packing (done once, outside the jitted forward)
# ----------------------------------------------------------------------------
def pack_acblock_weights(w_square, w_ver, w_hor, w_corner):
    """Fold the 4 branch kernels into a tap-major (9, Cin, 4*Cout) weight stack."""
    Cout, Cin = w_square.shape[0], w_square.shape[1]
    # Embed the (3,1)/(1,3) asymmetric kernels into 3x3 kernels (exact with pad=1).
    w_ver3 = jnp.zeros((Cout, Cin, 3, 3), jnp.float32).at[:, :, :, 1].set(
        w_ver[:, :, :, 0])
    w_hor3 = jnp.zeros((Cout, Cin, 3, 3), jnp.float32).at[:, :, 1, :].set(
        w_hor[:, :, 0, :])
    # Stack branches along output channels: [square | ver | hor | corner]
    w_all = jnp.concatenate([w_square, w_ver3, w_hor3, w_corner], axis=0)  # (4C,Ci,3,3)
    # OIHW -> (kh*kw, Cin, 4*Cout): the kernel indexes w_ref[t] per tap.
    return jnp.transpose(w_all, (2, 3, 1, 0)).reshape(9, Cin, 4 * Cout)


# ----------------------------------------------------------------------------
# Forward: NCHW in, NCHW out
# ----------------------------------------------------------------------------
def acblock_forward(x_nchw, w_taps, eps=1e-5, max_rows_per_tile=1024):
    N, Cin, H, W = x_nchw.shape
    _, _, Ct = w_taps.shape            # Ct = 4 * Cout
    Cout = Ct // 4
    # Lane-dense final output: only pad Cout when it is already >= 128 so the
    # extra HBM write stays < 2x (at tiny Cout padding would inflate it ~32x).
    Cout_p = _round_up(Cout, 128) if Cout >= 128 else Cout

    TH = _choose_row_tile(H, W, max_rows_per_tile)
    HT = H // TH
    R = H * W

    # NCHW -> NHWC (channels on the lane axis) and zero halo of 1.
    # TODO(synk): if the surrounding model is NHWC these two XLA passes (and the
    # final transpose back) disappear; the halo could also be synthesized in-kernel.
    x_nhwc = jnp.transpose(x_nchw, (0, 2, 3, 1)).astype(jnp.float32)
    x_pad = jnp.pad(x_nhwc, ((0, 0), (1, 1), (1, 1), (0, 0)))
    x_bytes = x_pad.size * 4

    cparams = pltpu.CompilerParams(
        dimension_semantics=("parallel", "parallel"),
        vmem_limit_bytes=32 * 1024 * 1024)

    # ---- Pass 1: conv + per-tile BN partial sums (stats only) ----------------
    ssum, ssq = pl.pallas_call(
        functools.partial(stats_kernel, TH=TH, W=W, Cin=Cin),
        out_shape=(
            jax.ShapeDtypeStruct((N * HT, 1, Ct), jnp.float32),
            jax.ShapeDtypeStruct((N * HT, 1, Ct), jnp.float32),
        ),
        grid=(N, HT),
        in_specs=[
            pl.BlockSpec((1, H + 2, W + 2, Cin), lambda n, i: (n, 0, 0, 0)),
            pl.BlockSpec((9, Cin, Ct), lambda n, i: (0, 0, 0)),   # VMEM-resident
        ],
        out_specs=[
            pl.BlockSpec((1, 1, Ct), lambda n, i: (n * HT + i, 0, 0)),
            pl.BlockSpec((1, 1, Ct), lambda n, i: (n * HT + i, 0, 0)),
        ],
        compiler_params=cparams,
        cost_estimate=pl.CostEstimate(
            flops=2 * N * R * 9 * Cin * Ct,
            transcendentals=0,
            bytes_accessed=x_bytes + w_taps.size * 4 + 2 * N * HT * Ct * 4),
    )(x_pad, w_taps)

    # ---- Global train-mode BN statistics (tiny (4*Cout,) vectors, plain JAX) --
    cnt = float(N * H * W)
    mean = jnp.sum(ssum[:, 0, :], axis=0) / cnt
    ex2 = jnp.sum(ssq[:, 0, :], axis=0) / cnt
    var = ex2 - mean * mean             # biased variance, like nn.BatchNorm2d (train)
    scale = jax.lax.rsqrt(var + eps)    # gamma = 1
    shift = -mean * scale               # beta  = 0

    # Fold BN scale + the 4-branch sum into the conv weights, shift into a bias:
    #   o = sum_t tap_t @ (w_t @ (diag(scale) @ sel)) + shift @ sel
    sel = jnp.tile(jnp.eye(Cout, dtype=jnp.float32), (4, 1))          # (4*Cout, Cout)
    if Cout_p > Cout:
        sel = jnp.pad(sel, ((0, 0), (0, Cout_p - Cout)))
    w_fold = jnp.einsum('kic,co->kio', w_taps, scale[:, None] * sel)  # (9,Cin,Cout_p)
    bias = (shift @ sel).reshape(1, Cout_p)

    # ---- Pass 2: conv recompute with folded weights -> final output -----------
    out2d = pl.pallas_call(
        functools.partial(out_kernel, TH=TH, W=W, Cin=Cin),
        out_shape=jax.ShapeDtypeStruct((N, R, Cout_p), jnp.float32),
        grid=(N, HT),
        in_specs=[
            pl.BlockSpec((1, H + 2, W + 2, Cin), lambda n, i: (n, 0, 0, 0)),
            pl.BlockSpec((9, Cin, Cout_p), lambda n, i: (0, 0, 0)),
            pl.BlockSpec((1, Cout_p), lambda n, i: (0, 0)),
        ],
        out_specs=pl.BlockSpec((1, TH * W, Cout_p), lambda n, i: (n, i, 0)),
        compiler_params=cparams,
        cost_estimate=pl.CostEstimate(
            flops=2 * N * R * 9 * Cin * Cout_p,
            transcendentals=0,
            bytes_accessed=x_bytes + w_fold.size * 4 + N * R * Cout_p * 4),
    )(x_pad, w_fold, bias)

    out = out2d.reshape(N, H, W, Cout_p)[..., :Cout]
    return jnp.transpose(out, (0, 3, 1, 2))


# ----------------------------------------------------------------------------
# Pure-JAX reference (mirrors the PyTorch forward, train-mode BatchNorm)
# ----------------------------------------------------------------------------
def acblock_reference(x, w_square, w_ver, w_hor, w_corner, eps=1e-5):
    def conv(xx, ww, pad_h, pad_w):
        return jax.lax.conv_general_dilated(
            xx, ww, window_strides=(1, 1),
            padding=((pad_h, pad_h), (pad_w, pad_w)),
            dimension_numbers=("NCHW", "OIHW", "NCHW"))

    def bn(y):
        m = jnp.mean(y, axis=(0, 2, 3), keepdims=True)
        v = jnp.mean((y - m) ** 2, axis=(0, 2, 3), keepdims=True)
        return (y - m) * jax.lax.rsqrt(v + eps)

    s = bn(conv(x, w_square, 1, 1))
    v = bn(conv(x, w_ver, 1, 0))
    h = bn(conv(x, w_hor, 0, 1))
    c = bn(conv(x, w_corner, 1, 1))
    return s + v + h + c


if __name__ == "__main__":
    # Small shapes consistent with the module: kernel_size=3, padding=1, stride=1.
    N, Cin, Cout, H, W = 2, 4, 4, 16, 16

    key = jax.random.PRNGKey(0)
    k_sq, k_ver, k_hor, k_cor, k_x = jax.random.split(key, 5)

    # Deterministic parameter init (shapes per ACBlock.__init__).
    w_square = jax.random.normal(k_sq, (Cout, Cin, 3, 3), jnp.float32)
    w_ver = jax.random.normal(k_ver, (Cout, Cin, 3, 1), jnp.float32)
    w_hor = jax.random.normal(k_hor, (Cout, Cin, 1, 3), jnp.float32)
    # four_corner(): random 3x3 kernel with the cross zeroed.
    # TODO(synk): PyTorch's four_corner_conv2d re-draws this kernel with torch.randn
    # on every forward; here it is sampled once, deterministically.
    w_corner = jax.random.normal(k_cor, (Cout, Cin, 3, 3), jnp.float32)
    w_corner = (w_corner
                .at[:, :, 0, 1].set(0.0)
                .at[:, :, 1, 0].set(0.0)
                .at[:, :, 1, 1].set(0.0)
                .at[:, :, 1, 2].set(0.0)
                .at[:, :, 2, 1].set(0.0))

    x = jax.random.normal(k_x, (N, Cin, H, W), jnp.float32)  # NCHW, like PyTorch

    # Host-side weight packing: done once, outside the jitted forward.
    w_taps = jax.block_until_ready(
        pack_acblock_weights(w_square, w_ver, w_hor, w_corner))

    # max_rows_per_tile=128 -> TH=8, HT=2: exercises the row-tiled grid (2, 2).
    fwd = jax.jit(functools.partial(acblock_forward, max_rows_per_tile=128))
    out = jax.block_until_ready(fwd(x, w_taps))

    ref = acblock_reference(x, w_square, w_ver, w_hor, w_corner)
    assert out.shape == (N, Cout, H, W), out.shape
    assert jnp.allclose(out, ref, rtol=1e-4, atol=1e-4), (
        float(jnp.max(jnp.abs(out - ref))))

    print("KERNEL_OK")
</pallas_src>

<mosaic_0001>
module attributes {stable_mosaic.version = 11 : i64} {
  func.func @stats_kernel(%arg0: i32, %arg1: i32, %arg2: memref<1x18x18x4xf32, #tpu.memory_space<vmem>>, %arg3: memref<9x4x16xf32, #tpu.memory_space<vmem>>, %arg4: memref<1x1x16xf32, #tpu.memory_space<vmem>>, %arg5: memref<1x1x16xf32, #tpu.memory_space<vmem>>) attributes {dimension_semantics = [#tpu.dimension_semantics<parallel>, #tpu.dimension_semantics<parallel>], iteration_bounds = array<i64: 2, 2>, scalar_prefetch = 0 : i64, scratch_operands = 0 : i64, tpu.core_type = #tpu.core_type<tc>, window_params = [{transform_indices = @transform_0, window_bounds = array<i64: 1, 18, 18, 4>}, {pipeline_mode = #tpu.pipeline_mode<synchronous>, transform_indices = @transform_1, window_bounds = array<i64: 9, 4, 16>}, {transform_indices = @transform_2, window_bounds = array<i64: 1, 1, 16>}, {transform_indices = @transform_3, window_bounds = array<i64: 1, 1, 16>}]} {
    %c8_i32 = arith.constant 8 : i32
    %0 = arith.muli %arg1, %c8_i32 : i32
    %c0_i32 = arith.constant 0 : i32
    %1 = arith.addi %0, %c0_i32 : i32
    %c0 = arith.constant 0 : index
    %2 = arith.index_cast %1 : i32 to index
    %c0_0 = arith.constant 0 : index
    %c0_1 = arith.constant 0 : index
    %3 = vector.load %arg2[%c0, %2, %c0_0, %c0_1] : memref<1x18x18x4xf32, #tpu.memory_space<vmem>>, vector<1x8x16x4xf32>
    %4 = vector.shape_cast %3 : vector<1x8x16x4xf32> to vector<8x16x4xf32>
    %5 = vector.shape_cast %4 : vector<8x16x4xf32> to vector<128x4xf32>
    %c0_2 = arith.constant 0 : index
    %c0_3 = arith.constant 0 : index
    %c0_4 = arith.constant 0 : index
    %6 = vector.load %arg3[%c0_2, %c0_3, %c0_4] : memref<9x4x16xf32, #tpu.memory_space<vmem>>, vector<1x4x16xf32>
    %7 = vector.shape_cast %6 : vector<1x4x16xf32> to vector<4x16xf32>
    %cst = arith.constant dense<0.000000e+00> : vector<128x16xf32>
    %8 = tpu.matmul %5, %7, %cst {dimension_numbers = #tpu.dot_dimension_numbers<[1], [0], [0], [1], [0, 0, 1, 1], [], []>} : vector<128x4xf32>, vector<4x16xf32>, vector<128x16xf32> -> vector<128x16xf32>
    %c0_i32_5 = arith.constant 0 : i32
    %9 = arith.addi %0, %c0_i32_5 : i32
    %c0_6 = arith.constant 0 : index
    %10 = arith.index_cast %9 : i32 to index
    %c1 = arith.constant 1 : index
    %c0_7 = arith.constant 0 : index
    %11 = vector.load %arg2[%c0_6, %10, %c1, %c0_7] : memref<1x18x18x4xf32, #tpu.memory_space<vmem>>, vector<1x8x16x4xf32>
    %12 = vector.shape_cast %11 : vector<1x8x16x4xf32> to vector<8x16x4xf32>
    %13 = vector.shape_cast %12 : vector<8x16x4xf32> to vector<128x4xf32>
    %c1_8 = arith.constant 1 : index
    %c0_9 = arith.constant 0 : index
    %c0_10 = arith.constant 0 : index
    %14 = vector.load %arg3[%c1_8, %c0_9, %c0_10] : memref<9x4x16xf32, #tpu.memory_space<vmem>>, vector<1x4x16xf32>
    %15 = vector.shape_cast %14 : vector<1x4x16xf32> to vector<4x16xf32>
    %cst_11 = arith.constant dense<0.000000e+00> : vector<128x16xf32>
    %16 = tpu.matmul %13, %15, %cst_11 {dimension_numbers = #tpu.dot_dimension_numbers<[1], [0], [0], [1], [0, 0, 1, 1], [], []>} : vector<128x4xf32>, vector<4x16xf32>, vector<128x16xf32> -> vector<128x16xf32>
    %17 = arith.addf %8, %16 : vector<128x16xf32>
    %c0_i32_12 = arith.constant 0 : i32
    %18 = arith.addi %0, %c0_i32_12 : i32
    %c0_13 = arith.constant 0 : index
    %19 = arith.index_cast %18 : i32 to index
    %c2 = arith.constant 2 : index
    %c0_14 = arith.constant 0 : index
    %20 = vector.load %arg2[%c0_13, %19, %c2, %c0_14] : memref<1x18x18x4xf32, #tpu.memory_space<vmem>>, vector<1x8x16x4xf32>
    %21 = vector.shape_cast %20 : vector<1x8x16x4xf32> to vector<8x16x4xf32>
    %22 = vector.shape_cast %21 : vector<8x16x4xf32> to vector<128x4xf32>
    %c2_15 = arith.constant 2 : index
    %c0_16 = arith.constant 0 : index
    %c0_17 = arith.constant 0 : index
    %23 = vector.load %arg3[%c2_15, %c0_16, %c0_17] : memref<9x4x16xf32, #tpu.memory_space<vmem>>, vector<1x4x16xf32>
    %24 = vector.shape_cast %23 : vector<1x4x16xf32> to vector<4x16xf32>
    %cst_18 = arith.constant dense<0.000000e+00> : vector<128x16xf32>
    %25 = tpu.matmul %22, %24, %cst_18 {dimension_numbers = #tpu.dot_dimension_numbers<[1], [0], [0], [1], [0, 0, 1, 1], [], []>} : vector<128x4xf32>, vector<4x16xf32>, vector<128x16xf32> -> vector<128x16xf32>
    %26 = arith.addf %17, %25 : vector<128x16xf32>
    %c1_i32 = arith.constant 1 : i32
    %27 = arith.addi %0, %c1_i32 : i32
    %c0_19 = arith.constant 0 : index
    %28 = arith.index_cast %27 : i32 to index
    %c0_20 = arith.constant 0 : index
    %c0_21 = arith.constant 0 : index
    %29 = vector.load %arg2[%c0_19, %28, %c0_20, %c0_21] : memref<1x18x18x4xf32, #tpu.memory_space<vmem>>, vector<1x8x16x4xf32>
    %30 = vector.shape_cast %29 : vector<1x8x16x4xf32> to vector<8x16x4xf32>
    %31 = vector.shape_cast %30 : vector<8x16x4xf32> to vector<128x4xf32>
    %c3 = arith.constant 3 : index
    %c0_22 = arith.constant 0 : index
    %c0_23 = arith.constant 0 : index
    %32 = vector.load %arg3[%c3, %c0_22, %c0_23] : memref<9x4x16xf32, #tpu.memory_space<vmem>>, vector<1x4x16xf32>
    %33 = vector.shape_cast %32 : vector<1x4x16xf32> to vector<4x16xf32>
    %cst_24 = arith.constant dense<0.000000e+00> : vector<128x16xf32>
    %34 = tpu.matmul %31, %33, %cst_24 {dimension_numbers = #tpu.dot_dimension_numbers<[1], [0], [0], [1], [0, 0, 1, 1], [], []>} : vector<128x4xf32>, vector<4x16xf32>, vector<128x16xf32> -> vector<128x16xf32>
    %35 = arith.addf %26, %34 : vector<128x16xf32>
    %c1_i32_25 = arith.constant 1 : i32
    %36 = arith.addi %0, %c1_i32_25 : i32
    %c0_26 = arith.constant 0 : index
    %37 = arith.index_cast %36 : i32 to index
    %c1_27 = arith.constant 1 : index
    %c0_28 = arith.constant 0 : index
    %38 = vector.load %arg2[%c0_26, %37, %c1_27, %c0_28] : memref<1x18x18x4xf32, #tpu.memory_space<vmem>>, vector<1x8x16x4xf32>
    %39 = vector.shape_cast %38 : vector<1x8x16x4xf32> to vector<8x16x4xf32>
    %40 = vector.shape_cast %39 : vector<8x16x4xf32> to vector<128x4xf32>
    %c4 = arith.constant 4 : index
    %c0_29 = arith.constant 0 : index
    %c0_30 = arith.constant 0 : index
    %41 = vector.load %arg3[%c4, %c0_29, %c0_30] : memref<9x4x16xf32, #tpu.memory_space<vmem>>, vector<1x4x16xf32>
    %42 = vector.shape_cast %41 : vector<1x4x16xf32> to vector<4x16xf32>
    %cst_31 = arith.constant dense<0.000000e+00> : vector<128x16xf32>
    %43 = tpu.matmul %40, %42, %cst_31 {dimension_numbers = #tpu.dot_dimension_numbers<[1], [0], [0], [1], [0, 0, 1, 1], [], []>} : vector<128x4xf32>, vector<4x16xf32>, vector<128x16xf32> -> vector<128x16xf32>
    %44 = arith.addf %35, %43 : vector<128x16xf32>
    %c1_i32_32 = arith.constant 1 : i32
    %45 = arith.addi %0, %c1_i32_32 : i32
    %c0_33 = arith.constant 0 : index
    %46 = arith.index_cast %45 : i32 to index
    %c2_34 = arith.constant 2 : index
    %c0_35 = arith.constant 0 : index
    %47 = vector.load %arg2[%c0_33, %46, %c2_34, %c0_35] : memref<1x18x18x4xf32, #tpu.memory_space<vmem>>, vector<1x8x16x4xf32>
    %48 = vector.shape_cast %47 : vector<1x8x16x4xf32> to vector<8x16x4xf32>
    %49 = vector.shape_cast %48 : vector<8x16x4xf32> to vector<128x4xf32>
    %c5 = arith.constant 5 : index
    %c0_36 = arith.constant 0 : index
    %c0_37 = arith.constant 0 : index
    %50 = vector.load %arg3[%c5, %c0_36, %c0_37] : memref<9x4x16xf32, #tpu.memory_space<vmem>>, vector<1x4x16xf32>
    %51 = vector.shape_cast %50 : vector<1x4x16xf32> to vector<4x16xf32>
    %cst_38 = arith.constant dense<0.000000e+00> : vector<128x16xf32>
    %52 = tpu.matmul %49, %51, %cst_38 {dimension_numbers = #tpu.dot_dimension_numbers<[1], [0], [0], [1], [0, 0, 1, 1], [], []>} : vector<128x4xf32>, vector<4x16xf32>, vector<128x16xf32> -> vector<128x16xf32>
    %53 = arith.addf %44, %52 : vector<128x16xf32>
    %c2_i32 = arith.constant 2 : i32
    %54 = arith.addi %0, %c2_i32 : i32
    %c0_39 = arith.constant 0 : index
    %55 = arith.index_cast %54 : i32 to index
    %c0_40 = arith.constant 0 : index
    %c0_41 = arith.constant 0 : index
    %56 = vector.load %arg2[%c0_39, %55, %c0_40, %c0_41] : memref<1x18x18x4xf32, #tpu.memory_space<vmem>>, vector<1x8x16x4xf32>
    %57 = vector.shape_cast %56 : vector<1x8x16x4xf32> to vector<8x16x4xf32>
    %58 = vector.shape_cast %57 : vector<8x16x4xf32> to vector<128x4xf32>
    %c6 = arith.constant 6 : index
    %c0_42 = arith.constant 0 : index
    %c0_43 = arith.constant 0 : index
    %59 = vector.load %arg3[%c6, %c0_42, %c0_43] : memref<9x4x16xf32, #tpu.memory_space<vmem>>, vector<1x4x16xf32>
    %60 = vector.shape_cast %59 : vector<1x4x16xf32> to vector<4x16xf32>
    %cst_44 = arith.constant dense<0.000000e+00> : vector<128x16xf32>
    %61 = tpu.matmul %58, %60, %cst_44 {dimension_numbers = #tpu.dot_dimension_numbers<[1], [0], [0], [1], [0, 0, 1, 1], [], []>} : vector<128x4xf32>, vector<4x16xf32>, vector<128x16xf32> -> vector<128x16xf32>
    %62 = arith.addf %53, %61 : vector<128x16xf32>
    %c2_i32_45 = arith.constant 2 : i32
    %63 = arith.addi %0, %c2_i32_45 : i32
    %c0_46 = arith.constant 0 : index
    %64 = arith.index_cast %63 : i32 to index
    %c1_47 = arith.constant 1 : index
    %c0_48 = arith.constant 0 : index
    %65 = vector.load %arg2[%c0_46, %64, %c1_47, %c0_48] : memref<1x18x18x4xf32, #tpu.memory_space<vmem>>, vector<1x8x16x4xf32>
    %66 = vector.shape_cast %65 : vector<1x8x16x4xf32> to vector<8x16x4xf32>
    %67 = vector.shape_cast %66 : vector<8x16x4xf32> to vector<128x4xf32>
    %c7 = arith.constant 7 : index
    %c0_49 = arith.constant 0 : index
    %c0_50 = arith.constant 0 : index
    %68 = vector.load %arg3[%c7, %c0_49, %c0_50] : memref<9x4x16xf32, #tpu.memory_space<vmem>>, vector<1x4x16xf32>
    %69 = vector.shape_cast %68 : vector<1x4x16xf32> to vector<4x16xf32>
    %cst_51 = arith.constant dense<0.000000e+00> : vector<128x16xf32>
    %70 = tpu.matmul %67, %69, %cst_51 {dimension_numbers = #tpu.dot_dimension_numbers<[1], [0], [0], [1], [0, 0, 1, 1], [], []>} : vector<128x4xf32>, vector<4x16xf32>, vector<128x16xf32> -> vector<128x16xf32>
    %71 = arith.addf %62, %70 : vector<128x16xf32>
    %c2_i32_52 = arith.constant 2 : i32
    %72 = arith.addi %0, %c2_i32_52 : i32
    %c0_53 = arith.constant 0 : index
    %73 = arith.index_cast %72 : i32 to index
    %c2_54 = arith.constant 2 : index
    %c0_55 = arith.constant 0 : index
    %74 = vector.load %arg2[%c0_53, %73, %c2_54, %c0_55] : memref<1x18x18x4xf32, #tpu.memory_space<vmem>>, vector<1x8x16x4xf32>
    %75 = vector.shape_cast %74 : vector<1x8x16x4xf32> to vector<8x16x4xf32>
    %76 = vector.shape_cast %75 : vector<8x16x4xf32> to vector<128x4xf32>
    %c8 = arith.constant 8 : index
    %c0_56 = arith.constant 0 : index
    %c0_57 = arith.constant 0 : index
    %77 = vector.load %arg3[%c8, %c0_56, %c0_57] : memref<9x4x16xf32, #tpu.memory_space<vmem>>, vector<1x4x16xf32>
    %78 = vector.shape_cast %77 : vector<1x4x16xf32> to vector<4x16xf32>
    %cst_58 = arith.constant dense<0.000000e+00> : vector<128x16xf32>
    %79 = tpu.matmul %76, %78, %cst_58 {dimension_numbers = #tpu.dot_dimension_numbers<[1], [0], [0], [1], [0, 0, 1, 1], [], []>} : vector<128x4xf32>, vector<4x16xf32>, vector<128x16xf32> -> vector<128x16xf32>
    %80 = arith.addf %71, %79 : vector<128x16xf32>
    %cst_59 = arith.constant dense<0.000000e+00> : vector<16xf32>
    %81 = vector.multi_reduction <add>, %80, %cst_59 [0] : vector<128x16xf32> to vector<16xf32>
    %82 = vector.shape_cast %81 : vector<16xf32> to vector<1x16xf32>
    %c0_60 = arith.constant 0 : index
    %c0_61 = arith.constant 0 : index
    %c0_62 = arith.constant 0 : index
    %83 = vector.load %arg4[%c0_60, %c0_61, %c0_62] : memref<1x1x16xf32, #tpu.memory_space<vmem>>, vector<1x1x16xf32>
    %84 = vector.shape_cast %83 : vector<1x1x16xf32> to vector<1x16xf32>
    %85 = vector.shape_cast %82 : vector<1x16xf32> to vector<1x1x16xf32>
    tpu.vector_store %arg4[%c0_60, %c0_61, %c0_62], %85 {strides = array<i32>} : memref<1x1x16xf32, #tpu.memory_space<vmem>>, vector<1x1x16xf32>,
    %86 = arith.mulf %80, %80 : vector<128x16xf32>
    %cst_63 = arith.constant dense<0.000000e+00> : vector<16xf32>
    %87 = vector.multi_reduction <add>, %86, %cst_63 [0] : vector<128x16xf32> to vector<16xf32>
    %88 = vector.shape_cast %87 : vector<16xf32> to vector<1x16xf32>
    %c0_64 = arith.constant 0 : index
    %c0_65 = arith.constant 0 : index
    %c0_66 = arith.constant 0 : index
    %89 = vector.load %arg5[%c0_64, %c0_65, %c0_66] : memref<1x1x16xf32, #tpu.memory_space<vmem>>, vector<1x1x16xf32>
    %90 = vector.shape_cast %89 : vector<1x1x16xf32> to vector<1x16xf32>
    %91 = vector.shape_cast %88 : vector<1x16xf32> to vector<1x1x16xf32>
    tpu.vector_store %arg5[%c0_64, %c0_65, %c0_66], %91 {strides = array<i32>} : memref<1x1x16xf32, #tpu.memory_space<vmem>>, vector<1x1x16xf32>,
    return
  }
  func.func @transform_0(%arg0: i32, %arg1: i32) -> (i32, i32, i32, i32) {
    %c0_i32 = arith.constant 0 : i32
    %c0_i32_0 = arith.constant 0 : i32
    %c0_i32_1 = arith.constant 0 : i32
    %c0_i32_2 = arith.constant 0 : i32
    return %arg0, %c0_i32, %c0_i32_0, %c0_i32_1 : i32, i32, i32, i32
  }
  func.func @transform_1(%arg0: i32, %arg1: i32) -> (i32, i32, i32) {
    %c0_i32 = arith.constant 0 : i32
    %c0_i32_0 = arith.constant 0 : i32
    %c0_i32_1 = arith.constant 0 : i32
    %c0_i32_2 = arith.constant 0 : i32
    return %c0_i32, %c0_i32_0, %c0_i32_1 : i32, i32, i32
  }
  func.func @transform_2(%arg0: i32, %arg1: i32) -> (i32, i32, i32) {
    %c2_i32 = arith.constant 2 : i32
    %0 = arith.muli %arg0, %c2_i32 : i32
    %1 = arith.addi %0, %arg1 : i32
    %c0_i32 = arith.constant 0 : i32
    %c0_i32_0 = arith.constant 0 : i32
    %c0_i32_1 = arith.constant 0 : i32
    return %1, %c0_i32, %c0_i32_0 : i32, i32, i32
  }
  func.func @transform_3(%arg0: i32, %arg1: i32) -> (i32, i32, i32) {
    %c2_i32 = arith.constant 2 : i32
    %0 = arith.muli %arg0, %c2_i32 : i32
    %1 = arith.addi %0, %arg1 : i32
    %c0_i32 = arith.constant 0 : i32
    %c0_i32_0 = arith.constant 0 : i32
    %c0_i32_1 = arith.constant 0 : i32
    return %1, %c0_i32, %c0_i32_0 : i32, i32, i32
  }
}

module attributes {stable_mosaic.version = 11 : i64} {
  func.func @out_kernel(%arg0: i32, %arg1: i32, %arg2: memref<1x18x18x4xf32, #tpu.memory_space<vmem>>, %arg3: memref<9x4x4xf32, #tpu.memory_space<vmem>>, %arg4: memref<1x4xf32, #tpu.memory_space<vmem>>, %arg5: memref<1x128x4xf32, #tpu.memory_space<vmem>>) attributes {dimension_semantics = [#tpu.dimension_semantics<parallel>, #tpu.dimension_semantics<parallel>], iteration_bounds = array<i64: 2, 2>, scalar_prefetch = 0 : i64, scratch_operands = 0 : i64, tpu.core_type = #tpu.core_type<tc>, window_params = [{transform_indices = @transform_0, window_bounds = array<i64: 1, 18, 18, 4>}, {pipeline_mode = #tpu.pipeline_mode<synchronous>, transform_indices = @transform_1, window_bounds = array<i64: 9, 4, 4>}, {pipeline_mode = #tpu.pipeline_mode<synchronous>, transform_indices = @transform_2, window_bounds = array<i64: 1, 4>}, {transform_indices = @transform_3, window_bounds = array<i64: 1, 128, 4>}]} {
    %c8_i32 = arith.constant 8 : i32
    %0 = arith.muli %arg1, %c8_i32 : i32
    %c0_i32 = arith.constant 0 : i32
    %1 = arith.addi %0, %c0_i32 : i32
    %c0 = arith.constant 0 : index
    %2 = arith.index_cast %1 : i32 to index
    %c0_0 = arith.constant 0 : index
    %c0_1 = arith.constant 0 : index
    %3 = vector.load %arg2[%c0, %2, %c0_0, %c0_1] : memref<1x18x18x4xf32, #tpu.memory_space<vmem>>, vector<1x8x16x4xf32>
    %4 = vector.shape_cast %3 : vector<1x8x16x4xf32> to vector<8x16x4xf32>
    %5 = vector.shape_cast %4 : vector<8x16x4xf32> to vector<128x4xf32>
    %c0_2 = arith.constant 0 : index
    %c0_3 = arith.constant 0 : index
    %c0_4 = arith.constant 0 : index
    %6 = vector.load %arg3[%c0_2, %c0_3, %c0_4] : memref<9x4x4xf32, #tpu.memory_space<vmem>>, vector<1x4x4xf32>
    %7 = vector.shape_cast %6 : vector<1x4x4xf32> to vector<4x4xf32>
    %cst = arith.constant dense<0.000000e+00> : vector<128x4xf32>
    %8 = tpu.matmul %5, %7, %cst {dimension_numbers = #tpu.dot_dimension_numbers<[1], [0], [0], [1], [0, 0, 1, 1], [], []>} : vector<128x4xf32>, vector<4x4xf32>, vector<128x4xf32> -> vector<128x4xf32>
    %c0_i32_5 = arith.constant 0 : i32
    %9 = arith.addi %0, %c0_i32_5 : i32
    %c0_6 = arith.constant 0 : index
    %10 = arith.index_cast %9 : i32 to index
    %c1 = arith.constant 1 : index
    %c0_7 = arith.constant 0 : index
    %11 = vector.load %arg2[%c0_6, %10, %c1, %c0_7] : memref<1x18x18x4xf32, #tpu.memory_space<vmem>>, vector<1x8x16x4xf32>
    %12 = vector.shape_cast %11 : vector<1x8x16x4xf32> to vector<8x16x4xf32>
    %13 = vector.shape_cast %12 : vector<8x16x4xf32> to vector<128x4xf32>
    %c1_8 = arith.constant 1 : index
    %c0_9 = arith.constant 0 : index
    %c0_10 = arith.constant 0 : index
    %14 = vector.load %arg3[%c1_8, %c0_9, %c0_10] : memref<9x4x4xf32, #tpu.memory_space<vmem>>, vector<1x4x4xf32>
    %15 = vector.shape_cast %14 : vector<1x4x4xf32> to vector<4x4xf32>
    %cst_11 = arith.constant dense<0.000000e+00> : vector<128x4xf32>
    %16 = tpu.matmul %13, %15, %cst_11 {dimension_numbers = #tpu.dot_dimension_numbers<[1], [0], [0], [1], [0, 0, 1, 1], [], []>} : vector<128x4xf32>, vector<4x4xf32>, vector<128x4xf32> -> vector<128x4xf32>
    %17 = arith.addf %8, %16 : vector<128x4xf32>
    %c0_i32_12 = arith.constant 0 : i32
    %18 = arith.addi %0, %c0_i32_12 : i32
    %c0_13 = arith.constant 0 : index
    %19 = arith.index_cast %18 : i32 to index
    %c2 = arith.constant 2 : index
    %c0_14 = arith.constant 0 : index
    %20 = vector.load %arg2[%c0_13, %19, %c2, %c0_14] : memref<1x18x18x4xf32, #tpu.memory_space<vmem>>, vector<1x8x16x4xf32>
    %21 = vector.shape_cast %20 : vector<1x8x16x4xf32> to vector<8x16x4xf32>
    %22 = vector.shape_cast %21 : vector<8x16x4xf32> to vector<128x4xf32>
    %c2_15 = arith.constant 2 : index
    %c0_16 = arith.constant 0 : index
    %c0_17 = arith.constant 0 : index
    %23 = vector.load %arg3[%c2_15, %c0_16, %c0_17] : memref<9x4x4xf32, #tpu.memory_space<vmem>>, vector<1x4x4xf32>
    %24 = vector.shape_cast %23 : vector<1x4x4xf32> to vector<4x4xf32>
    %cst_18 = arith.constant dense<0.000000e+00> : vector<128x4xf32>
    %25 = tpu.matmul %22, %24, %cst_18 {dimension_numbers = #tpu.dot_dimension_numbers<[1], [0], [0], [1], [0, 0, 1, 1], [], []>} : vector<128x4xf32>, vector<4x4xf32>, vector<128x4xf32> -> vector<128x4xf32>
    %26 = arith.addf %17, %25 : vector<128x4xf32>
    %c1_i32 = arith.constant 1 : i32
    %27 = arith.addi %0, %c1_i32 : i32
    %c0_19 = arith.constant 0 : index
    %28 = arith.index_cast %27 : i32 to index
    %c0_20 = arith.constant 0 : index
    %c0_21 = arith.constant 0 : index
    %29 = vector.load %arg2[%c0_19, %28, %c0_20, %c0_21] : memref<1x18x18x4xf32, #tpu.memory_space<vmem>>, vector<1x8x16x4xf32>
    %30 = vector.shape_cast %29 : vector<1x8x16x4xf32> to vector<8x16x4xf32>
    %31 = vector.shape_cast %30 : vector<8x16x4xf32> to vector<128x4xf32>
    %c3 = arith.constant 3 : index
    %c0_22 = arith.constant 0 : index
    %c0_23 = arith.constant 0 : index
    %32 = vector.load %arg3[%c3, %c0_22, %c0_23] : memref<9x4x4xf32, #tpu.memory_space<vmem>>, vector<1x4x4xf32>
    %33 = vector.shape_cast %32 : vector<1x4x4xf32> to vector<4x4xf32>
    %cst_24 = arith.constant dense<0.000000e+00> : vector<128x4xf32>
    %34 = tpu.matmul %31, %33, %cst_24 {dimension_numbers = #tpu.dot_dimension_numbers<[1], [0], [0], [1], [0, 0, 1, 1], [], []>} : vector<128x4xf32>, vector<4x4xf32>, vector<128x4xf32> -> vector<128x4xf32>
    %35 = arith.addf %26, %34 : vector<128x4xf32>
    %c1_i32_25 = arith.constant 1 : i32
    %36 = arith.addi %0, %c1_i32_25 : i32
    %c0_26 = arith.constant 0 : index
    %37 = arith.index_cast %36 : i32 to index
    %c1_27 = arith.constant 1 : index
    %c0_28 = arith.constant 0 : index
    %38 = vector.load %arg2[%c0_26, %37, %c1_27, %c0_28] : memref<1x18x18x4xf32, #tpu.memory_space<vmem>>, vector<1x8x16x4xf32>
    %39 = vector.shape_cast %38 : vector<1x8x16x4xf32> to vector<8x16x4xf32>
    %40 = vector.shape_cast %39 : vector<8x16x4xf32> to vector<128x4xf32>
    %c4 = arith.constant 4 : index
    %c0_29 = arith.constant 0 : index
    %c0_30 = arith.constant 0 : index
    %41 = vector.load %arg3[%c4, %c0_29, %c0_30] : memref<9x4x4xf32, #tpu.memory_space<vmem>>, vector<1x4x4xf32>
    %42 = vector.shape_cast %41 : vector<1x4x4xf32> to vector<4x4xf32>
    %cst_31 = arith.constant dense<0.000000e+00> : vector<128x4xf32>
    %43 = tpu.matmul %40, %42, %cst_31 {dimension_numbers = #tpu.dot_dimension_numbers<[1], [0], [0], [1], [0, 0, 1, 1], [], []>} : vector<128x4xf32>, vector<4x4xf32>, vector<128x4xf32> -> vector<128x4xf32>
    %44 = arith.addf %35, %43 : vector<128x4xf32>
    %c1_i32_32 = arith.constant 1 : i32
    %45 = arith.addi %0, %c1_i32_32 : i32
    %c0_33 = arith.constant 0 : index
    %46 = arith.index_cast %45 : i32 to index
    %c2_34 = arith.constant 2 : index
    %c0_35 = arith.constant 0 : index
    %47 = vector.load %arg2[%c0_33, %46, %c2_34, %c0_35] : memref<1x18x18x4xf32, #tpu.memory_space<vmem>>, vector<1x8x16x4xf32>
    %48 = vector.shape_cast %47 : vector<1x8x16x4xf32> to vector<8x16x4xf32>
    %49 = vector.shape_cast %48 : vector<8x16x4xf32> to vector<128x4xf32>
    %c5 = arith.constant 5 : index
    %c0_36 = arith.constant 0 : index
    %c0_37 = arith.constant 0 : index
    %50 = vector.load %arg3[%c5, %c0_36, %c0_37] : memref<9x4x4xf32, #tpu.memory_space<vmem>>, vector<1x4x4xf32>
    %51 = vector.shape_cast %50 : vector<1x4x4xf32> to vector<4x4xf32>
    %cst_38 = arith.constant dense<0.000000e+00> : vector<128x4xf32>
    %52 = tpu.matmul %49, %51, %cst_38 {dimension_numbers = #tpu.dot_dimension_numbers<[1], [0], [0], [1], [0, 0, 1, 1], [], []>} : vector<128x4xf32>, vector<4x4xf32>, vector<128x4xf32> -> vector<128x4xf32>
    %53 = arith.addf %44, %52 : vector<128x4xf32>
    %c2_i32 = arith.constant 2 : i32
    %54 = arith.addi %0, %c2_i32 : i32
    %c0_39 = arith.constant 0 : index
    %55 = arith.index_cast %54 : i32 to index
    %c0_40 = arith.constant 0 : index
    %c0_41 = arith.constant 0 : index
    %56 = vector.load %arg2[%c0_39, %55, %c0_40, %c0_41] : memref<1x18x18x4xf32, #tpu.memory_space<vmem>>, vector<1x8x16x4xf32>
    %57 = vector.shape_cast %56 : vector<1x8x16x4xf32> to vector<8x16x4xf32>
    %58 = vector.shape_cast %57 : vector<8x16x4xf32> to vector<128x4xf32>
    %c6 = arith.constant 6 : index
    %c0_42 = arith.constant 0 : index
    %c0_43 = arith.constant 0 : index
    %59 = vector.load %arg3[%c6, %c0_42, %c0_43] : memref<9x4x4xf32, #tpu.memory_space<vmem>>, vector<1x4x4xf32>
    %60 = vector.shape_cast %59 : vector<1x4x4xf32> to vector<4x4xf32>
    %cst_44 = arith.constant dense<0.000000e+00> : vector<128x4xf32>
    %61 = tpu.matmul %58, %60, %cst_44 {dimension_numbers = #tpu.dot_dimension_numbers<[1], [0], [0], [1], [0, 0, 1, 1], [], []>} : vector<128x4xf32>, vector<4x4xf32>, vector<128x4xf32> -> vector<128x4xf32>
    %62 = arith.addf %53, %61 : vector<128x4xf32>
    %c2_i32_45 = arith.constant 2 : i32
    %63 = arith.addi %0, %c2_i32_45 : i32
    %c0_46 = arith.constant 0 : index
    %64 = arith.index_cast %63 : i32 to index
    %c1_47 = arith.constant 1 : index
    %c0_48 = arith.constant 0 : index
    %65 = vector.load %arg2[%c0_46, %64, %c1_47, %c0_48] : memref<1x18x18x4xf32, #tpu.memory_space<vmem>>, vector<1x8x16x4xf32>
    %66 = vector.shape_cast %65 : vector<1x8x16x4xf32> to vector<8x16x4xf32>
    %67 = vector.shape_cast %66 : vector<8x16x4xf32> to vector<128x4xf32>
    %c7 = arith.constant 7 : index
    %c0_49 = arith.constant 0 : index
    %c0_50 = arith.constant 0 : index
    %68 = vector.load %arg3[%c7, %c0_49, %c0_50] : memref<9x4x4xf32, #tpu.memory_space<vmem>>, vector<1x4x4xf32>
    %69 = vector.shape_cast %68 : vector<1x4x4xf32> to vector<4x4xf32>
    %cst_51 = arith.constant dense<0.000000e+00> : vector<128x4xf32>
    %70 = tpu.matmul %67, %69, %cst_51 {dimension_numbers = #tpu.dot_dimension_numbers<[1], [0], [0], [1], [0, 0, 1, 1], [], []>} : vector<128x4xf32>, vector<4x4xf32>, vector<128x4xf32> -> vector<128x4xf32>
    %71 = arith.addf %62, %70 : vector<128x4xf32>
    %c2_i32_52 = arith.constant 2 : i32
    %72 = arith.addi %0, %c2_i32_52 : i32
    %c0_53 = arith.constant 0 : index
    %73 = arith.index_cast %72 : i32 to index
    %c2_54 = arith.constant 2 : index
    %c0_55 = arith.constant 0 : index
    %74 = vector.load %arg2[%c0_53, %73, %c2_54, %c0_55] : memref<1x18x18x4xf32, #tpu.memory_space<vmem>>, vector<1x8x16x4xf32>
    %75 = vector.shape_cast %74 : vector<1x8x16x4xf32> to vector<8x16x4xf32>
    %76 = vector.shape_cast %75 : vector<8x16x4xf32> to vector<128x4xf32>
    %c8 = arith.constant 8 : index
    %c0_56 = arith.constant 0 : index
    %c0_57 = arith.constant 0 : index
    %77 = vector.load %arg3[%c8, %c0_56, %c0_57] : memref<9x4x4xf32, #tpu.memory_space<vmem>>, vector<1x4x4xf32>
    %78 = vector.shape_cast %77 : vector<1x4x4xf32> to vector<4x4xf32>
    %cst_58 = arith.constant dense<0.000000e+00> : vector<128x4xf32>
    %79 = tpu.matmul %76, %78, %cst_58 {dimension_numbers = #tpu.dot_dimension_numbers<[1], [0], [0], [1], [0, 0, 1, 1], [], []>} : vector<128x4xf32>, vector<4x4xf32>, vector<128x4xf32> -> vector<128x4xf32>
    %80 = arith.addf %71, %79 : vector<128x4xf32>
    %c0_59 = arith.constant 0 : index
    %c0_60 = arith.constant 0 : index
    %81 = vector.load %arg4[%c0_59, %c0_60] : memref<1x4xf32, #tpu.memory_space<vmem>>, vector<1x4xf32>
    %82 = vector.broadcast %81 : vector<1x4xf32> to vector<128x4xf32>
    %83 = arith.addf %80, %82 : vector<128x4xf32>
    %c0_61 = arith.constant 0 : index
    %c0_62 = arith.constant 0 : index
    %c0_63 = arith.constant 0 : index
    %84 = vector.load %arg5[%c0_61, %c0_62, %c0_63] : memref<1x128x4xf32, #tpu.memory_space<vmem>>, vector<1x128x4xf32>
    %85 = vector.shape_cast %84 : vector<1x128x4xf32> to vector<128x4xf32>
    %86 = vector.shape_cast %83 : vector<128x4xf32> to vector<1x128x4xf32>
    tpu.vector_store %arg5[%c0_61, %c0_62, %c0_63], %86 {strides = array<i32>} : memref<1x128x4xf32, #tpu.memory_space<vmem>>, vector<1x128x4xf32>,
    return
  }
  func.func @transform_0(%arg0: i32, %arg1: i32) -> (i32, i32, i32, i32) {
    %c0_i32 = arith.constant 0 : i32
    %c0_i32_0 = arith.constant 0 : i32
    %c0_i32_1 = arith.constant 0 : i32
    %c0_i32_2 = arith.constant 0 : i32
    return %arg0, %c0_i32, %c0_i32_0, %c0_i32_1 : i32, i32, i32, i32
  }
  func.func @transform_1(%arg0: i32, %arg1: i32) -> (i32, i32, i32) {
    %c0_i32 = arith.constant 0 : i32
    %c0_i32_0 = arith.constant 0 : i32
    %c0_i32_1 = arith.constant 0 : i32
    %c0_i32_2 = arith.constant 0 : i32
    return %c0_i32, %c0_i32_0, %c0_i32_1 : i32, i32, i32
  }
  func.func @transform_2(%arg0: i32, %arg1: i32) -> (i32, i32) {
    %c0_i32 = arith.constant 0 : i32
    %c0_i32_0 = arith.constant 0 : i32
    %c0_i32_1 = arith.constant 0 : i32
    return %c0_i32, %c0_i32_0 : i32, i32
  }
  func.func @transform_3(%arg0: i32, %arg1: i32) -> (i32, i32, i32) {
    %c0_i32 = arith.constant 0 : i32
    %c0_i32_0 = arith.constant 0 : i32
    return %arg0, %arg1, %c0_i32 : i32, i32, i32
  }
}

</mosaic_0001>

<bundles_post_ra>
// kernel: tile.9
= control target key start
LH: loop header
LB: loop body
LE: loop exit
PB: predicated region body
PF: predicated region fallthrough
CT: control target
= control target key end

     0   :  { %vm21_vm0 = vcmask 31744   ;;  %s56_s14 = smov 4   ;;  %s57_s15 = smov 8   ;;  %vm27_vm1 = vcmask 130144   ;;  %vm33_vm2 = vcmask 97344   ;;  %vm39_vm3 = vcmask 64544   ;;  %s83_s0 = inlined_call_operand.vmem [shape: f32[4,4,4], index: 0, kind: input, shape index: {}]   ;;  %s84_s1 = inlined_call_operand.vmem [shape: f32[16,4], index: 1, kind: output, shape index: {}]  }
   0x1   :  { %v49_v0 = vld [vmem:[%s83_s0 + $0xc] sm:$0xf]  ;;  %v50_v1 = vld [vmem:[%s83_s0 + $0x8] sm:$0xf]  ;;  %v51_v2 = vld [vmem:[%s83_s0 + $0x4] sm:$0xf] }
   0x2   :  { %8 = vst [vmem:[#allocation1 + $0x18] sm:$0xf] %v49_v0  ;;  %13 = vst [vmem:[#allocation1 + $0x10] sm:$0xf] %v50_v1  ;;  %v18_v3 = vld [vmem:[%s83_s0] sm:$0xf] }
   0x3   :  { %17 = vst [vmem:[#allocation1 + $0x8] sm:$0xf] %v51_v2  ;;  %19 = vst [vmem:[#allocation1] sm:$0xf] %v18_v3  ;;  %s55_s0 = smov 12  }
   0xa   :  { %v24_v4 = vld [vmem:[#allocation1 + $0x3] ss:$8 sm:$0xf]   ;;  %v36_v5 = vld [vmem:[#allocation1 + $0x1] ss:$8 sm:$0xf]  }
   0xb   :  { %25 = vrot.lane.b32.xlu0 %v24_v4, %s55_s0  ;;  %v20_v6 = vld [vmem:[#allocation1] ss:$8 sm:$0xf]   ;;  %v30_v7 = vld [vmem:[#allocation1 + $0x2] ss:$8 sm:$0xf]   ;;  %37 = vrot.lane.b32.xlu1 %v36_v5, %s56_s14 }
   0xc   :  { %22 = vst.msk [vmem:[#allocation0] sm:$0xf] %vm21_vm0, %v20_v6  }
   0xf   :  { %31 = vrot.lane.b32.xlu0 %v30_v7, %s57_s15 }
  0x7d   :  { %v26_v8 = vpop.permute.xlu0 %25   ;;  %v38_v9 = vpop.permute.xlu1 %37  }
  0x7e   :  { %28 = vst.msk [vmem:[#allocation0] sm:$0xf] %vm27_vm1, %v26_v8  }
  0x81   :  { %v32_v10 = vpop.permute.xlu0 %31  }
  0x82   :  { %34 = vst.msk [vmem:[#allocation0] sm:$0xf] %vm33_vm2, %v32_v10  }
  0x83   :  { %40 = vst.msk [vmem:[#allocation0] sm:$0xf] %vm39_vm3, %v38_v9  }
  0x8a   :  { %v44_v11 = vld [vmem:[#allocation0] sm:$0xf] }
  0x8b   :  { %46 = vst [vmem:[%s84_s1] sm:$0xf] %v44_v11 }

// kernel: acblock_forward.2
= control target key start
LH: loop header
LB: loop body
LE: loop exit
PB: predicated region body
PF: predicated region fallthrough
CT: control target
= control target key end

     0   :  { %s3351_s12 = smov 0   ;;  %s3353_s13 = smov 0   ;;  %s3921_s0 = inlined_call_operand.vmem [shape: f32[2,18,18,4], index: 0, kind: input, shape index: {}]   ;;  %s3922_s1 = inlined_call_operand.vmem [shape: f32[9,4,16], index: 1, kind: input, shape index: {}]   ;;  %s3923_s2 = inlined_call_operand.vmem [shape: f32[4,1,16], index: 2, kind: output, shape index: {0}]   ;;  %s3924_s3 = inlined_call_operand.vmem [shape: f32[4,1,16], index: 3, kind: output, shape index: {1}]  }
   0x1   :  { %s3355_s14 = smov 0   ;;  %s3357_s15 = smov 0  }
   0x2   :  { %s3359_s16 = smov 0  }
   0x3 LB: > { %s23_s17 = sadd.s32 1, %s3321_s14  ;;  %s26_s18 = sadd.s32 1, %s3325_s15  ;;  %s3329_s16 = sphi %s3359_s16, %s14_s16   ;;  %s3325_s15 = sphi %s3357_s15, %s3928_s15   ;;  %s3321_s14 = sphi %s3355_s14, %s3927_s14   ;;  %s3317_s13 = sphi %s3353_s13, %s3926_s13   ;;  %s3313_s12 = sphi %s3351_s12, %s3925_s12  }
   0x4   : > { %p24_p0 = scmp.ge.s32.totalorder %s23_s17, 2  ;;  %p2464_p1 = scmp.ge.s32.totalorder %s3329_s16, 1 }
   0x5   : > { %p160_p2 = scmp.lt.s32.totalorder %s3329_s16, 5 }
   0x6   : > { %s3930_s17 = smov (%p24_p0, %s23_s17), 0  ;;  %s3932_s18 = smov (!%p24_p0, %s26_s18), %s3325_s15 }
   0x7   : > { %p161_p3 = pnand %p2464_p1, %p160_p2  ;;  %p28_p4 = scmp.ge.s32.totalorder %s3932_s18, 2 }
   0x8   : > { %v2470_v0 = vld [vmem:[%s3922_s1 + $0x4] sm:$0xf] (!%p161_p3)  ;;  %vm295_vm0 = vcmask (!%p161_p3), 1043456   ;;  %v3391_v1 = vld [vmem:[%s3922_s1 + $0x10] sm:$0xf] (!%p161_p3)  ;;  %p189_p5 = scmp.lt.s32.totalorder (!%p161_p3), %s3317_s13, 1 }
   0x9   : > { %s3934_s18 = smov (%p28_p4, %s3932_s18), 0  ;;  %164 = sbr.rel (%p161_p3) target bundleno = 399 (0x18f), region = 28 }
   0xa   : > { %2886 = vmatprep.subr.msk.mxu1 (!%p161_p3), %vm295_vm0, %v2470_v0  ;;  %2990 = vmatprep.subr.msk.mxu0 (!%p161_p3), %vm295_vm0, %v3391_v1  ;;  %v227_v2 = vld [vmem:[%s3922_s1] sm:$0xf] (!%p161_p3)  ;;  %v2609_v3 = vld [vmem:[%s3922_s1 + $0x14] sm:$0xf] (!%p161_p3)  ;;  %s2469_s28 = smul.u32 (!%p161_p3), 192, %s3313_s12  ;;  %vm246_vm1 = vcmask (!%p161_p3), 31744  }
   0xb   : > { %2887 = vmatpush3.msk.msra.mxu1 (!%p161_p3), %vm295_vm0, %v2470_v0  ;;  %2991 = vmatpush3.msk.msra.mxu0 (!%p161_p3), %vm295_vm0, %v3391_v1  ;;  %v2645_v9 = vld [vmem:[%s3922_s1 + $0x18] sm:$0xf] (!%p161_p3)  ;;  %v3432_v10 = vld [vmem:[%s3922_s1 + $0x8] sm:$0xf] (!%p161_p3)  ;;  %v3495_v20 = vld [vmem:[%s3922_s1 + $0x1c] sm:$0xf] (!%p161_p3) }
   0xc   : > { %2912 = vmatprep.subr.msk.mxu1 (!%p161_p3), %vm295_vm0, %v227_v2  ;;  %3016 = vmatprep.subr.msk.mxu0 (!%p161_p3), %vm295_vm0, %v2609_v3  ;;  %v2541_v37 = vld [vmem:[%s3922_s1 + $0xc] sm:$0xf] (!%p161_p3)  ;;  %v2713_v51 = vld [vmem:[%s3922_s1 + $0x20] sm:$0xf] (!%p161_p3)  ;;  %vm2256_vm2 = vcmask (!%p161_p3), 130048   ;;  %s2466_s24 = sshll.u32 (!%p161_p3), %s3317_s13, 1 }
   0xd   : > { %s195_s25 = sadd.s32 (!%p161_p3), %s3313_s12, %s2466_s24  ;;  %vm2294_vm3 = vcmask (!%p161_p3), 122880  }
   0xe   : > { %p196_p6 = scmp.lt.s32.totalorder (!%p161_p3), %s195_s25, 3 }
  0x10   : > { %s190_s27 = scalar_select %p189_p5, %s3317_s13, 1 }
  0x11   : > { %s3936_s25 = smov (!%p196_p6, %s195_s25), 3 }
  0x12   : > { %s3250_s29 = smul.u32 432, %s190_s27  ;;  %s198_s12 = scalar_lea.vmem %s3923_s2, %s3936_s25 }
  0x14   : > { %s193_s5 = scalar_lea.vmem %s3921_s0, %s3250_s29  ;;  %s205_s29 = scalar_lea.vmem %s3924_s3, %s3936_s25 }
  0x15   : > { %s3413_s6 = scalar_lea.vmem %s193_s5, %s2469_s28 }
  0x16   : > { %v228_v4 = vld [vmem:[%s3413_s6 + $0x1] sm:$0xff]  ;;  %v2559_v5 = vld [vmem:[%s3413_s6 + $0x19] sm:$0xff]  ;;  %v229_v6 = vld [vmem:[%s3413_s6 + $0x9] sm:$0xff] }
  0x17   : > { %2888 = vmatprep.mubr.msk.f32.mxu1 %vm246_vm1, %v228_v4  ;;  %2992 = vmatprep.mubr.msk.f32.mxu0 %vm246_vm1, %v2559_v5  ;;  %v2560_v7 = vld [vmem:[%s3413_s6 + $0x21] sm:$0xff]  ;;  %v3422_v8 = vld [vmem:[%s3413_s6 + $0x31] sm:$0xff]  ;;  %v3437_v11 = vld [vmem:[%s3413_s6 + $0x39] sm:$0xff] }
  0x18   : > { %2889 = vmatmul.mubr.msk.f32.vlgmr.msra.gmra.mrb[0].mxu1 %vm246_vm1, %v229_v6  ;;  %2993 = vmatmul.mubr.msk.f32.vlgmr.msra.gmra.mrb[0].mxu0 %vm246_vm1, %v2560_v7  ;;  %v3443_v12 = vld [vmem:[%s3413_s6 + $0x49] sm:$0xff]  ;;  %v3456_v13 = vld [vmem:[%s3413_s6 + $0x51] sm:$0xff]  ;;  %v3459_v14 = vld [vmem:[%s3413_s6 + $0x61] sm:$0xff] }
  0x19   : > { %2913 = vmatpush3.msk.msra.mxu1 %vm295_vm0, %v227_v2  ;;  %3017 = vmatpush3.msk.msra.mxu0 %vm295_vm0, %v2609_v3  ;;  %v3470_v15 = vld [vmem:[%s3413_s6 + $0x69] sm:$0xff]  ;;  %v3473_v16 = vld [vmem:[%s3413_s6 + $0x1a] sm:$0xff]  ;;  %v3490_v19 = vld [vmem:[%s3413_s6 + $0x32] sm:$0xff] }
  0x1a   : > { %2891 = vmatprep.mubr.msk.f32.mxu1 %vm246_vm1, %v2559_v5  ;;  %2995 = vmatprep.mubr.msk.f32.mxu0 %vm246_vm1, %v3422_v8  ;;  %v3484_v17 = vld [vmem:[%s3413_s6 + $0x22] sm:$0xff]  ;;  %v3487_v18 = vld [vmem:[%s3413_s6 + $0x79] sm:$0xff]  ;;  %v3513_v23 = vld [vmem:[%s3413_s6 + $0x91] sm:$0xff] }
  0x1b   : > { %3042 = vmatprep.subr.msk.mxu0 %vm295_vm0, %v2645_v9  ;;  %2938 = vmatprep.subr.msk.mxu1 %vm295_vm0, %v3432_v10  ;;  %v3505_v21 = vld [vmem:[%s3413_s6 + $0x81] sm:$0xff]  ;;  %v3516_v24 = vld [vmem:[%s3413_s6 + $0x4a] sm:$0xff]  ;;  %v3529_v25 = vld [vmem:[%s3413_s6 + $0x99] sm:$0xff] }
  0x1c   : > { %2892 = vmatmul.mubr.msk.f32.gmra.mrb[2].mxu1 %vm246_vm1, %v2560_v7  ;;  %2996 = vmatmul.mubr.msk.f32.gmra.mrb[2].mxu0 %vm246_vm1, %v3437_v11  ;;  %v3508_v22 = vld [vmem:[%s3413_s6 + $0x3a] sm:$0xff]  ;;  %v3532_v26 = vld [vmem:[%s3413_s6 + $0x52] sm:$0xff]  ;;  %v3535_v27 = vld [vmem:[%s3413_s6 + $0xa9] sm:$0xff] }
  0x1d   : > { %2894 = vmatprep.mubr.msk.f32.mxu1 %vm246_vm1, %v3422_v8  ;;  %2998 = vmatprep.mubr.msk.f32.mxu0 %vm246_vm1, %v3443_v12  ;;  %v3538_v28 = vld [vmem:[%s3413_s6 + $0x62] sm:$0xff]  ;;  %v3549_v29 = vld [vmem:[%s3413_s6 + $0xb1] sm:$0xff]  ;;  %v3556_v32 = vld [vmem:[%s3413_s6 + $0x7a] sm:$0xff] }
  0x1e   : > { %v3552_v30 = vld [vmem:[%s3413_s6 + $0x6a] sm:$0xff]  ;;  %v211_v31 = vld [vmem:[%s3413_s6] sm:$0xff]  ;;  %v3570_v35 = vld [vmem:[%s3413_s6 + $0x18] sm:$0xff] }
  0x1f   : > { %v212_v33 = vld [vmem:[%s3413_s6 + $0x8] sm:$0xff]  ;;  %v3573_v36 = vld [vmem:[%s3413_s6 + $0x92] sm:$0xff]  ;;  %v3586_v38 = vld [vmem:[%s3413_s6 + $0x20] sm:$0xff] }
  0x20   : > { %2895 = vmatmul.mubr.msk.f32.gmra.mrb[4].mxu1 %vm246_vm1, %v3437_v11  ;;  %2999 = vmatmul.mubr.msk.f32.gmra.mrb[4].mxu0 %vm246_vm1, %v3456_v13  ;;  %v3567_v34 = vld [vmem:[%s3413_s6 + $0x82] sm:$0xff]  ;;  %v3589_v39 = vld [vmem:[%s3413_s6 + $0x9a] sm:$0xff]  ;;  %v3594_v40 = vld [vmem:[%s3413_s6 + $0x30] sm:$0xff] }
  0x21   : > { %2897 = vmatprep.mubr.msk.f32.mxu1 %vm246_vm1, %v3443_v12  ;;  %3001 = vmatprep.mubr.msk.f32.mxu0 %vm246_vm1, %v3459_v14  ;;  %v3597_v41 = vld [vmem:[%s3413_s6 + $0xaa] sm:$0xff]  ;;  %v3609_v42 = vld [vmem:[%s3413_s6 + $0x38] sm:$0xff]  ;;  %v3618_v45 = vld [vmem:[%s3413_s6 + $0xc2] sm:$0xff] }
  0x22   : > { %v3612_v43 = vld [vmem:[%s3413_s6 + $0xb2] sm:$0xff]  ;;  %v3615_v44 = vld [vmem:[%s3413_s6 + $0x48] sm:$0xff]  ;;  %v3635_v48 = vld [vmem:[%s3413_s6 + $0x60] sm:$0xff] }
  0x23   : > { %v3629_v46 = vld [vmem:[%s3413_s6 + $0x50] sm:$0xff]  ;;  %v3646_v49 = vld [vmem:[%s3413_s6 + $0x68] sm:$0xff]  ;;  %v3649_v50 = vld [vmem:[%s3413_s6 + $0x78] sm:$0xff] }
  0x24   : > { %2898 = vmatmul.mubr.msk.f32.gmra.mrb[6].mxu1 %vm246_vm1, %v3456_v13  ;;  %3002 = vmatmul.mubr.msk.f32.gmra.mrb[6].mxu0 %vm246_vm1, %v3470_v15  ;;  %v3632_v47 = vld [vmem:[%s3413_s6 + $0xca] sm:$0xff]  ;;  %v3663_v52 = vld [vmem:[%s3413_s6 + $0x80] sm:$0xff]  ;;  %v3680_v54 = vld [vmem:[%s3413_s6 + $0x98] sm:$0xff] }
  0x25   : > { %2900 = vmatprep.mubr.msk.f32.mxu1 %vm246_vm1, %v3459_v14  ;;  %3018 = vmatprep.mubr.msk.f32.mxu0 %vm246_vm1, %v3473_v16  ;;  %v3668_v53 = vld [vmem:[%s3413_s6 + $0x90] sm:$0xff]  ;;  %v3683_v55 = vld [vmem:[%s3413_s6 + $0xa8] sm:$0xff]  ;;  %v3714_v59 = vld [vmem:[%s3413_s6 + $0xc0] sm:$0xff] }
  0x26   : > { %v3694_v56 = vld [vmem:[%s3413_s6 + $0xb0] sm:$0xff]  ;;  %v640_v57 = vld [vmem:[%s3413_s6 + $0x2] sm:$0xff]  ;;  %v2643_v61 = vld [vmem:[%s3413_s6 + $0xd8] sm:$0xff] }
  0x27   : > { %v641_v58 = vld [vmem:[%s3413_s6 + $0xa] sm:$0xff]  ;;  %v2644_v62 = vld [vmem:[%s3413_s6 + $0xe0] sm:$0xff] }
  0x28   : > { %2901 = vmatmul.mubr.msk.f32.gmra.mrb[8].mxu1 %vm246_vm1, %v3470_v15  ;;  %3019 = vmatmul.mubr.msk.f32.vlgmr.msra.gmra.mrb[0].mxu0 %vm246_vm1, %v3484_v17  ;;  %v2642_v60 = vld [vmem:[%s3413_s6 + $0xc8] sm:$0xff]  ;;  %v2711_v3 = vld [vmem:[%s3413_s6 + $0xda] sm:$0xff] }
  0x29   : > { %3043 = vmatpush3.msk.msra.mxu0 %vm295_vm0, %v2645_v9  ;;  %2903 = vmatprep.mubr.msk.f32.mxu1 %vm246_vm1, %v3487_v18  ;;  %v2675_v63 = vld [vmem:[%s3413_s6 + $0xc1] sm:$0xff]  ;;  %v2676_v0 = vld [vmem:[%s3413_s6 + $0xc9] sm:$0xff] }
  0x2a   : > { %3021 = vmatprep.mubr.msk.f32.mxu0 %vm246_vm1, %v3490_v19  ;;  %3068 = vmatprep.subr.msk.mxu0 %vm295_vm0, %v3495_v20  ;;  %v2678_v2 = vld [vmem:[%s3413_s6 + $0xe1] sm:$0xff] }
  0x2b   : > { %v2712_v4 = vld [vmem:[%s3413_s6 + $0xe2] sm:$0xff] }
  0x2c   : > { %2904 = vmatmul.mubr.msk.f32.gmra.mrb[10].mxu1 %vm246_vm1, %v3505_v21  ;;  %3022 = vmatmul.mubr.msk.f32.gmra.mrb[2].mxu0 %vm246_vm1, %v3508_v22 }
  0x2d   : > { %2906 = vmatprep.mubr.msk.f32.mxu1 %vm246_vm1, %v3513_v23  ;;  %3024 = vmatprep.mubr.msk.f32.mxu0 %vm246_vm1, %v3516_v24 }
  0x30   : > { %2907 = vmatmul.mubr.msk.f32.gmra.mrb[12].mxu1 %vm246_vm1, %v3529_v25  ;;  %3025 = vmatmul.mubr.msk.f32.gmra.mrb[4].mxu0 %vm246_vm1, %v3532_v26 }
  0x31   : > { %2909 = vmatprep.mubr.msk.f32.mxu1 %vm246_vm1, %v3535_v27  ;;  %3027 = vmatprep.mubr.msk.f32.mxu0 %vm246_vm1, %v3538_v28 }
  0x34   : > { %2910 = vmatmul.mubr.msk.f32.gmra.mrb[14].mxu1 %vm246_vm1, %v3549_v29  ;;  %3028 = vmatmul.mubr.msk.f32.gmra.mrb[6].mxu0 %vm246_vm1, %v3552_v30 }
  0x35   : > { %2914 = vmatprep.mubr.msk.f32.mxu1 %vm246_vm1, %v211_v31  ;;  %3030 = vmatprep.mubr.msk.f32.mxu0 %vm246_vm1, %v3556_v32 }
  0x38   : > { %2915 = vmatmul.mubr.msk.f32.vlgmr.msra.gmra.mrb[0].mxu1 %vm246_vm1, %v212_v33  ;;  %3031 = vmatmul.mubr.msk.f32.gmra.mrb[8].mxu0 %vm246_vm1, %v3567_v34 }
  0x39   : > { %2939 = vmatpush3.msk.msra.mxu1 %vm295_vm0, %v3432_v10  ;;  %2917 = vmatprep.mubr.msk.f32.mxu1 %vm246_vm1, %v3570_v35 }
  0x3a   : > { %3033 = vmatprep.mubr.msk.f32.mxu0 %vm246_vm1, %v3573_v36  ;;  %2964 = vmatprep.subr.msk.mxu1 %vm295_vm0, %v2541_v37 }
  0x3c   : > { %2918 = vmatmul.mubr.msk.f32.gmra.mrb[2].mxu1 %vm246_vm1, %v3586_v38  ;;  %3034 = vmatmul.mubr.msk.f32.gmra.mrb[10].mxu0 %vm246_vm1, %v3589_v39 }
  0x3d   : > { %2920 = vmatprep.mubr.msk.f32.mxu1 %vm246_vm1, %v3594_v40  ;;  %3036 = vmatprep.mubr.msk.f32.mxu0 %vm246_vm1, %v3597_v41 }
  0x40   : > { %2921 = vmatmul.mubr.msk.f32.gmra.mrb[4].mxu1 %vm246_vm1, %v3609_v42  ;;  %3037 = vmatmul.mubr.msk.f32.gmra.mrb[12].mxu0 %vm246_vm1, %v3612_v43 }
  0x41   : > { %2923 = vmatprep.mubr.msk.f32.mxu1 %vm246_vm1, %v3615_v44  ;;  %3039 = vmatprep.mubr.msk.f32.mxu0 %vm246_vm1, %v3618_v45 }
  0x44   : > { %2924 = vmatmul.mubr.msk.f32.gmra.mrb[6].mxu1 %vm246_vm1, %v3629_v46  ;;  %3040 = vmatmul.mubr.msk.f32.gmra.mrb[14].mxu0 %vm246_vm1, %v3632_v47 }
  0x45   : > { %2926 = vmatprep.mubr.msk.f32.mxu1 %vm246_vm1, %v3635_v48  ;;  %3044 = vmatprep.mubr.msk.f32.mxu0 %vm246_vm1, %v3594_v40 }
  0x48   : > { %2927 = vmatmul.mubr.msk.f32.gmra.mrb[8].mxu1 %vm246_vm1, %v3646_v49  ;;  %3045 = vmatmul.mubr.msk.f32.vlgmr.msra.gmra.mrb[0].mxu0 %vm246_vm1, %v3609_v42 }
  0x49   : > { %3069 = vmatpush3.msk.msra.mxu0 %vm295_vm0, %v3495_v20  ;;  %2929 = vmatprep.mubr.msk.f32.mxu1 %vm246_vm1, %v3649_v50 }
  0x4a   : > { %3047 = vmatprep.mubr.msk.f32.mxu0 %vm246_vm1, %v3615_v44  ;;  %3094 = vmatprep.subr.msk.mxu0 %vm295_vm0, %v2713_v51 }
  0x4c   : > { %2930 = vmatmul.mubr.msk.f32.gmra.mrb[10].mxu1 %vm246_vm1, %v3663_v52  ;;  %3048 = vmatmul.mubr.msk.f32.gmra.mrb[2].mxu0 %vm246_vm1, %v3629_v46 }
  0x4d   : > { %2932 = vmatprep.mubr.msk.f32.mxu1 %vm246_vm1, %v3668_v53  ;;  %3050 = vmatprep.mubr.msk.f32.mxu0 %vm246_vm1, %v3635_v48 }
  0x50   : > { %2933 = vmatmul.mubr.msk.f32.gmra.mrb[12].mxu1 %vm246_vm1, %v3680_v54  ;;  %3051 = vmatmul.mubr.msk.f32.gmra.mrb[4].mxu0 %vm246_vm1, %v3646_v49 }
  0x51   : > { %2935 = vmatprep.mubr.msk.f32.mxu1 %vm246_vm1, %v3683_v55  ;;  %3053 = vmatprep.mubr.msk.f32.mxu0 %vm246_vm1, %v3649_v50 }
  0x54   : > { %2936 = vmatmul.mubr.msk.f32.gmra.mrb[14].mxu1 %vm246_vm1, %v3694_v56  ;;  %3054 = vmatmul.mubr.msk.f32.gmra.mrb[6].mxu0 %vm246_vm1, %v3663_v52 }
  0x55   : > { %2940 = vmatprep.mubr.msk.f32.mxu1 %vm246_vm1, %v640_v57  ;;  %3056 = vmatprep.mubr.msk.f32.mxu0 %vm246_vm1, %v3668_v53 }
  0x58   : > { %2941 = vmatmul.mubr.msk.f32.vlgmr.msra.gmra.mrb[0].mxu1 %vm246_vm1, %v641_v58  ;;  %3057 = vmatmul.mubr.msk.f32.gmra.mrb[8].mxu0 %vm246_vm1, %v3680_v54 }
  0x59   : > { %2965 = vmatpush3.msk.msra.mxu1 %vm295_vm0, %v2541_v37  ;;  %2943 = vmatprep.mubr.msk.f32.mxu1 %vm246_vm1, %v3473_v16 }
  0x5a   : > { %3059 = vmatprep.mubr.msk.f32.mxu0 %vm246_vm1, %v3683_v55  ;;  %3120 = vmatprep.subr.msk.mxu1 %vm295_vm0, %v3391_v1 }
  0x5c   : > { %2944 = vmatmul.mubr.msk.f32.gmra.mrb[2].mxu1 %vm246_vm1, %v3484_v17  ;;  %3060 = vmatmul.mubr.msk.f32.gmra.mrb[10].mxu0 %vm246_vm1, %v3694_v56 }
  0x5d   : > { %2946 = vmatprep.mubr.msk.f32.mxu1 %vm246_vm1, %v3490_v19  ;;  %3062 = vmatprep.mubr.msk.f32.mxu0 %vm246_vm1, %v3714_v59 }
  0x60   : > { %2947 = vmatmul.mubr.msk.f32.gmra.mrb[4].mxu1 %vm246_vm1, %v3508_v22  ;;  %3063 = vmatmul.mubr.msk.f32.gmra.mrb[12].mxu0 %vm246_vm1, %v2642_v60 }
  0x61   : > { %2949 = vmatprep.mubr.msk.f32.mxu1 %vm246_vm1, %v3516_v24  ;;  %3065 = vmatprep.mubr.msk.f32.mxu0 %vm246_vm1, %v2643_v61 }
  0x64   : > { %2950 = vmatmul.mubr.msk.f32.gmra.mrb[6].mxu1 %vm246_vm1, %v3532_v26  ;;  %3066 = vmatmul.mubr.msk.f32.gmra.mrb[14].mxu0 %vm246_vm1, %v2644_v62 }
  0x65   : > { %2952 = vmatprep.mubr.msk.f32.mxu1 %vm246_vm1, %v3538_v28  ;;  %3070 = vmatprep.mubr.msk.f32.mxu0 %vm246_vm1, %v3422_v8 }
  0x68   : > { %2953 = vmatmul.mubr.msk.f32.gmra.mrb[8].mxu1 %vm246_vm1, %v3552_v30  ;;  %3071 = vmatmul.mubr.msk.f32.vlgmr.msra.gmra.mrb[0].mxu0 %vm246_vm1, %v3437_v11 }
  0x69   : > { %3095 = vmatpush3.msk.msra.mxu0 %vm295_vm0, %v2713_v51  ;;  %2955 = vmatprep.mubr.msk.f32.mxu1 %vm246_vm1, %v3556_v32 }
  0x6a   : > { %3073 = vmatprep.mubr.msk.f32.mxu0 %vm246_vm1, %v3443_v12 }
  0x6c   : > { %2956 = vmatmul.mubr.msk.f32.gmra.mrb[10].mxu1 %vm246_vm1, %v3567_v34  ;;  %3074 = vmatmul.mubr.msk.f32.gmra.mrb[2].mxu0 %vm246_vm1, %v3456_v13 }
  0x6d   : > { %2958 = vmatprep.mubr.msk.f32.mxu1 %vm246_vm1, %v3573_v36  ;;  %3076 = vmatprep.mubr.msk.f32.mxu0 %vm246_vm1, %v3459_v14 }
  0x70   : > { %2959 = vmatmul.mubr.msk.f32.gmra.mrb[12].mxu1 %vm246_vm1, %v3589_v39  ;;  %3077 = vmatmul.mubr.msk.f32.gmra.mrb[4].mxu0 %vm246_vm1, %v3470_v15 }
  0x71   : > { %2961 = vmatprep.mubr.msk.f32.mxu1 %vm246_vm1, %v3597_v41  ;;  %3079 = vmatprep.mubr.msk.f32.mxu0 %vm246_vm1, %v3487_v18 }
  0x74   : > { %2962 = vmatmul.mubr.msk.f32.gmra.mrb[14].mxu1 %vm246_vm1, %v3612_v43  ;;  %3080 = vmatmul.mubr.msk.f32.gmra.mrb[6].mxu0 %vm246_vm1, %v3505_v21 }
  0x75   : > { %2966 = vmatprep.mubr.msk.f32.mxu1 %vm246_vm1, %v3570_v35  ;;  %3082 = vmatprep.mubr.msk.f32.mxu0 %vm246_vm1, %v3513_v23 }
  0x78   : > { %2967 = vmatmul.mubr.msk.f32.vlgmr.msra.gmra.mrb[0].mxu1 %vm246_vm1, %v3586_v38  ;;  %3083 = vmatmul.mubr.msk.f32.gmra.mrb[8].mxu0 %vm246_vm1, %v3529_v25 }
  0x79   : > { %3121 = vmatpush3.msk.msra.mxu1 %vm295_vm0, %v3391_v1  ;;  %2969 = vmatprep.mubr.msk.f32.mxu1 %vm246_vm1, %v3594_v40  ;;  %v2677_v1 = vld [vmem:[%s3413_s6 + $0xd9] sm:$0xff] }
  0x7a   : > { %3085 = vmatprep.mubr.msk.f32.mxu0 %vm246_vm1, %v3535_v27 }
  0x7c   : > { %2970 = vmatmul.mubr.msk.f32.gmra.mrb[2].mxu1 %vm246_vm1, %v3609_v42  ;;  %3086 = vmatmul.mubr.msk.f32.gmra.mrb[10].mxu0 %vm246_vm1, %v3549_v29 }
  0x7d   : > { %2972 = vmatprep.mubr.msk.f32.mxu1 %vm246_vm1, %v3615_v44  ;;  %3088 = vmatprep.mubr.msk.f32.mxu0 %vm246_vm1, %v2675_v63 }
  0x80   : > { %2973 = vmatmul.mubr.msk.f32.gmra.mrb[4].mxu1 %vm246_vm1, %v3629_v46  ;;  %3089 = vmatmul.mubr.msk.f32.gmra.mrb[12].mxu0 %vm246_vm1, %v2676_v0 }
  0x81   : > { %2975 = vmatprep.mubr.msk.f32.mxu1 %vm246_vm1, %v3635_v48  ;;  %3091 = vmatprep.mubr.msk.f32.mxu0 %vm246_vm1, %v2677_v1 }
  0x84   : > { %2976 = vmatmul.mubr.msk.f32.gmra.mrb[6].mxu1 %vm246_vm1, %v3646_v49  ;;  %3092 = vmatmul.mubr.msk.f32.gmra.mrb[14].mxu0 %vm246_vm1, %v2678_v2 }
  0x85   : > { %2978 = vmatprep.mubr.msk.f32.mxu1 %vm246_vm1, %v3649_v50  ;;  %3096 = vmatprep.mubr.msk.f32.mxu0 %vm246_vm1, %v3490_v19 }
  0x88   : > { %2979 = vmatmul.mubr.msk.f32.gmra.mrb[8].mxu1 %vm246_vm1, %v3663_v52  ;;  %3097 = vmatmul.mubr.msk.f32.vlgmr.msra.gmra.mrb[0].mxu0 %vm246_vm1, %v3508_v22 }
  0x89   : > { %2981 = vmatprep.mubr.msk.f32.mxu1 %vm246_vm1, %v3668_v53  ;;  %3099 = vmatprep.mubr.msk.f32.mxu0 %vm246_vm1, %v3516_v24 }
  0x8c   : > { %2982 = vmatmul.mubr.msk.f32.gmra.mrb[10].mxu1 %vm246_vm1, %v3680_v54  ;;  %3100 = vmatmul.mubr.msk.f32.gmra.mrb[2].mxu0 %vm246_vm1, %v3532_v26 }
  0x8d   : > { %2984 = vmatprep.mubr.msk.f32.mxu1 %vm246_vm1, %v3683_v55  ;;  %3102 = vmatprep.mubr.msk.f32.mxu0 %vm246_vm1, %v3538_v28 }
  0x90   : > { %2985 = vmatmul.mubr.msk.f32.gmra.mrb[12].mxu1 %vm246_vm1, %v3694_v56  ;;  %3103 = vmatmul.mubr.msk.f32.gmra.mrb[4].mxu0 %vm246_vm1, %v3552_v30 }
  0x91   : > { %2987 = vmatprep.mubr.msk.f32.mxu1 %vm246_vm1, %v3714_v59  ;;  %3105 = vmatprep.mubr.msk.f32.mxu0 %vm246_vm1, %v3556_v32 }
  0x94   : > { %2988 = vmatmul.mubr.msk.f32.gmra.mrb[14].mxu1 %vm246_vm1, %v2642_v60  ;;  %3106 = vmatmul.mubr.msk.f32.gmra.mrb[6].mxu0 %vm246_vm1, %v3567_v34 }
  0x95   : > { %3004 = vmatprep.mubr.msk.f32.mxu1 %vm246_vm1, %v3487_v18  ;;  %3108 = vmatprep.mubr.msk.f32.mxu0 %vm246_vm1, %v3573_v36 }
  0x98   : > { %3005 = vmatmul.mubr.msk.f32.vlgmr.msra.gmra.mrb[8].mxu1 %vm246_vm1, %v3505_v21  ;;  %3109 = vmatmul.mubr.msk.f32.gmra.mrb[8].mxu0 %vm246_vm1, %v3589_v39 }
  0x99   : > { %3007 = vmatprep.mubr.msk.f32.mxu1 %vm246_vm1, %v3513_v23  ;;  %3111 = vmatprep.mubr.msk.f32.mxu0 %vm246_vm1, %v3597_v41 }
  0x9c   : > { %3008 = vmatmul.mubr.msk.f32.gmra.mrb[10].mxu1 %vm246_vm1, %v3529_v25  ;;  %3112 = vmatmul.mubr.msk.f32.gmra.mrb[10].mxu0 %vm246_vm1, %v3612_v43 }
  0x9d   : > { %3010 = vmatprep.mubr.msk.f32.mxu1 %vm246_vm1, %v3535_v27  ;;  %3114 = vmatprep.mubr.msk.f32.mxu0 %vm246_vm1, %v3618_v45 }
  0xa0   : > { %3011 = vmatmul.mubr.msk.f32.gmra.mrb[12].mxu1 %vm246_vm1, %v3549_v29  ;;  %3115 = vmatmul.mubr.msk.f32.gmra.mrb[12].mxu0 %vm246_vm1, %v3632_v47 }
  0xa1   : > { %3013 = vmatprep.mubr.msk.f32.mxu1 %vm246_vm1, %v2675_v63  ;;  %3117 = vmatprep.mubr.msk.f32.mxu0 %vm246_vm1, %v2711_v3 }
  0xa4   : > { %3014 = vmatmul.mubr.msk.f32.gmra.mrb[14].mxu1 %vm246_vm1, %v2676_v0  ;;  %3118 = vmatmul.mubr.msk.f32.gmra.mrb[14].mxu0 %vm246_vm1, %v2712_v4 }
 0x14b   : > { %v2968_v5 = vpop.f32.mrb[0].mxu1 }
 0x14c   : > { %v1008_v6 = vpop.f32.mrb[1].mxu1 }
 0x14f   : > { %v2971_v7 = vpop.f32.mrb[2].mxu1 }
 0x150   : > { %v1018_v8 = vpop.f32.mrb[3].mxu1 }
 0x153   : > { %v2974_v9 = vpop.f32.mrb[4].mxu1 }
 0x154   : > { %v1028_v10 = vpop.f32.mrb[5].mxu1 }
 0x157   : > { %v2977_v11 = vpop.f32.mrb[6].mxu1 }
 0x158   : > { %v1038_v12 = vpop.f32.mrb[7].mxu1 }
 0x15b   : > { %v3098_v13 = vpop.f32.mrb[0].mxu0 }
 0x15c   : > { %v3122_v14 = vadd.f32 %v3098_v13, %v2968_v5  ;;  %v2161_v15 = vpop.f32.mrb[1].mxu0 }
 0x15d   : > { %v3123_v16 = vadd.f32 %v2161_v15, %v1008_v6 }
 0x15e   : > { %v2258_v17 = vsel %vm2256_vm2, %v3122_v14, 0.0  ;;  %v2297_v18 = vmul.f32 %v3122_v14, %v3122_v14 }
 0x15f   : > { %v2257_v19 = vsel %vm2256_vm2, %v3123_v16, 0.0  ;;  %v2296_v20 = vmul.f32 %v3123_v16, %v3123_v16  ;;  %v3101_v21 = vpop.f32.mrb[2].mxu0 }
 0x160   : > { %v2313_v22 = vsel %vm2256_vm2, %v2297_v18, 0.0  ;;  %v2259_v23 = vadd.f32 %v2258_v17, %v2257_v19  ;;  %v3124_v24 = vadd.f32 %v3101_v21, %v2971_v7  ;;  %v2171_v25 = vpop.f32.mrb[3].mxu0 }
 0x161   : > { %v2312_v26 = vsel %vm2256_vm2, %v2296_v20, 0.0  ;;  %v3125_v27 = vadd.f32 %v2171_v25, %v1018_v8 }
 0x162   : > { %v2314_v28 = vadd.f32 %v2313_v22, %v2312_v26  ;;  %v2299_v29 = vmul.f32 %v3124_v24, %v3124_v24  ;;  %v2262_v36 = vsel %vm2256_vm2, %v3124_v24, 0.0 }
 0x163   : > { %v2260_v30 = vsel %vm2256_vm2, %v3125_v27, 0.0  ;;  %v2298_v31 = vmul.f32 %v3125_v27, %v3125_v27  ;;  %v3104_v32 = vpop.f32.mrb[4].mxu0 }
 0x164   : > { %v2261_v33 = vadd.f32 %v2260_v30, %v2259_v23  ;;  %v3126_v34 = vadd.f32 %v3104_v32, %v2974_v9  ;;  %v2181_v35 = vpop.f32.mrb[5].mxu0  ;;  %v2317_v41 = vsel %vm2256_vm2, %v2299_v29, 0.0 }
 0x165   : > { %v2315_v37 = vsel %vm2256_vm2, %v2298_v31, 0.0  ;;  %v3127_v38 = vadd.f32 %v2181_v35, %v1028_v10 }
 0x166   : > { %v2316_v39 = vadd.f32 %v2315_v37, %v2314_v28  ;;  %v2263_v40 = vadd.f32 %v2262_v36, %v2261_v33  ;;  %v2301_v42 = vmul.f32 %v3126_v34, %v3126_v34  ;;  %v2266_v50 = vsel %vm2256_vm2, %v3126_v34, 0.0 }
 0x167   : > { %v2264_v43 = vsel %vm2256_vm2, %v3127_v38, 0.0  ;;  %v2300_v44 = vmul.f32 %v3127_v38, %v3127_v38  ;;  %v3107_v45 = vpop.f32.mrb[6].mxu0 }
 0x168   : > { %v2265_v46 = vadd.f32 %v2264_v43, %v2263_v40  ;;  %v2318_v47 = vadd.f32 %v2317_v41, %v2316_v39  ;;  %v3128_v48 = vadd.f32 %v3107_v45, %v2977_v11  ;;  %v2191_v49 = vpop.f32.mrb[7].mxu0  ;;  %v2321_v55 = vsel %vm2256_vm2, %v2301_v42, 0.0 }
 0x169   : > { %v2319_v51 = vsel %vm2256_vm2, %v2300_v44, 0.0  ;;  %v3129_v52 = vadd.f32 %v2191_v49, %v1038_v12 }
 0x16a   : > { %v2320_v53 = vadd.f32 %v2319_v51, %v2318_v47  ;;  %v2267_v54 = vadd.f32 %v2266_v50, %v2265_v46  ;;  %v2303_v56 = vmul.f32 %v3128_v48, %v3128_v48  ;;  %v2270_v2 = vsel %vm2256_vm2, %v3128_v48, 0.0 }
 0x16b   : > { %v2268_v57 = vsel %vm2256_vm2, %v3129_v52, 0.0  ;;  %v2302_v58 = vmul.f32 %v3129_v52, %v3129_v52  ;;  %v3006_v59 = vpop.f32.mrb[8].mxu1  ;;  %v3110_v60 = vpop.f32.mrb[8].mxu0 }
 0x16c   : > { %v2269_v61 = vadd.f32 %v2268_v57, %v2267_v54  ;;  %v2322_v62 = vadd.f32 %v2321_v55, %v2320_v53  ;;  %v3130_v63 = vadd.f32 %v3110_v60, %v3006_v59  ;;  %v1278_v0 = vpop.f32.mrb[9].mxu1  ;;  %v2201_v1 = vpop.f32.mrb[9].mxu0  ;;  %v2325_v7 = vsel %vm2256_vm2, %v2303_v56, 0.0 }
 0x16d   : > { %v2323_v3 = vsel %vm2256_vm2, %v2302_v58, 0.0  ;;  %v3131_v4 = vadd.f32 %v2201_v1, %v1278_v0 }
 0x16e   : > { %v2324_v5 = vadd.f32 %v2323_v3, %v2322_v62  ;;  %v2271_v6 = vadd.f32 %v2270_v2, %v2269_v61  ;;  %v2305_v8 = vmul.f32 %v3130_v63, %v3130_v63  ;;  %v2274_v18 = vsel %vm2256_vm2, %v3130_v63, 0.0 }
 0x16f   : > { %v2272_v9 = vsel %vm2256_vm2, %v3131_v4, 0.0  ;;  %v2304_v10 = vmul.f32 %v3131_v4, %v3131_v4  ;;  %v3009_v11 = vpop.f32.mrb[10].mxu1  ;;  %v3113_v12 = vpop.f32.mrb[10].mxu0 }
 0x170   : > { %v2273_v13 = vadd.f32 %v2272_v9, %v2271_v6  ;;  %v2326_v14 = vadd.f32 %v2325_v7, %v2324_v5  ;;  %v3132_v15 = vadd.f32 %v3113_v12, %v3009_v11  ;;  %v1288_v16 = vpop.f32.mrb[11].mxu1  ;;  %v2211_v17 = vpop.f32.mrb[11].mxu0  ;;  %v2329_v23 = vsel %vm2256_vm2, %v2305_v8, 0.0 }
 0x171   : > { %v2327_v19 = vsel %vm2256_vm2, %v2304_v10, 0.0  ;;  %v3133_v20 = vadd.f32 %v2211_v17, %v1288_v16 }
 0x172   : > { %v2328_v21 = vadd.f32 %v2327_v19, %v2326_v14  ;;  %v2275_v22 = vadd.f32 %v2274_v18, %v2273_v13  ;;  %v2307_v24 = vmul.f32 %v3132_v15, %v3132_v15  ;;  %v2278_v34 = vsel %vm2256_vm2, %v3132_v15, 0.0 }
 0x173   : > { %v2276_v25 = vsel %vm2256_vm2, %v3133_v20, 0.0  ;;  %v2306_v26 = vmul.f32 %v3133_v20, %v3133_v20  ;;  %v3012_v27 = vpop.f32.mrb[12].mxu1  ;;  %v3116_v28 = vpop.f32.mrb[12].mxu0 }
 0x174   : > { %v2277_v29 = vadd.f32 %v2276_v25, %v2275_v22  ;;  %v2330_v30 = vadd.f32 %v2329_v23, %v2328_v21  ;;  %v3134_v31 = vadd.f32 %v3116_v28, %v3012_v27  ;;  %v1298_v32 = vpop.f32.mrb[13].mxu1  ;;  %v2221_v33 = vpop.f32.mrb[13].mxu0  ;;  %v2333_v39 = vsel %vm2256_vm2, %v2307_v24, 0.0 }
 0x175   : > { %v2331_v35 = vsel %vm2256_vm2, %v2306_v26, 0.0  ;;  %v3135_v36 = vadd.f32 %v2221_v33, %v1298_v32 }
 0x176   : > { %v2332_v37 = vadd.f32 %v2331_v35, %v2330_v30  ;;  %v2279_v38 = vadd.f32 %v2278_v34, %v2277_v29  ;;  %v2309_v40 = vmul.f32 %v3134_v31, %v3134_v31  ;;  %v2282_v50 = vsel %vm2256_vm2, %v3134_v31, 0.0 }
 0x177   : > { %v2280_v41 = vsel %vm2256_vm2, %v3135_v36, 0.0  ;;  %v2308_v42 = vmul.f32 %v3135_v36, %v3135_v36  ;;  %v3015_v43 = vpop.f32.mrb[14].mxu1  ;;  %v3119_v44 = vpop.f32.mrb[14].mxu0 }
 0x178   : > { %v2281_v45 = vadd.f32 %v2280_v41, %v2279_v38  ;;  %v2334_v46 = vadd.f32 %v2333_v39, %v2332_v37  ;;  %v3136_v47 = vadd.f32 %v3119_v44, %v3015_v43  ;;  %v1308_v48 = vpop.f32.mrb[15].mxu1  ;;  %v2231_v49 = vpop.f32.mrb[15].mxu0  ;;  %v2337_v55 = vsel %vm2256_vm2, %v2309_v40, 0.0 }
 0x179   : > { %v2335_v51 = vsel %vm2256_vm2, %v2308_v42, 0.0  ;;  %v3137_v52 = vadd.f32 %v2231_v49, %v1308_v48 }
 0x17a   : > { %v2336_v53 = vadd.f32 %v2335_v51, %v2334_v46  ;;  %v2283_v54 = vadd.f32 %v2282_v50, %v2281_v45  ;;  %v2311_v56 = vmul.f32 %v3136_v47, %v3136_v47  ;;  %v2286_v61 = vsel %vm2256_vm2, %v3136_v47, 0.0 }
 0x17b   : > { %v2284_v57 = vsel %vm2256_vm2, %v3137_v52, 0.0  ;;  %v2310_v58 = vmul.f32 %v3137_v52, %v3137_v52 }
 0x17c   : > { %v2285_v59 = vadd.f32 %v2284_v57, %v2283_v54  ;;  %v2338_v60 = vadd.f32 %v2337_v55, %v2336_v53  ;;  %v2341_v1 = vsel %vm2256_vm2, %v2311_v56, 0.0 }
 0x17d   : > { %v2339_v62 = vsel %vm2256_vm2, %v2310_v58, 0.0 }
 0x17e   : > { %v2287_v63 = vadd.f32 %v2286_v61, %v2285_v59  ;;  %v2340_v0 = vadd.f32 %v2339_v62, %v2338_v60 }
 0x180   : > { %v2288_v2 = vrot.slane %v2287_v63, 4  ;;  %v2342_v3 = vadd.f32 %v2341_v1, %v2340_v0 }
 0x182   : > { %v2289_v4 = vadd.f32 %v2288_v2, %v2287_v63  ;;  %v2343_v5 = vrot.slane %v2342_v3, 4 }
 0x184   : > { %v2290_v6 = vrot.slane %v2289_v4, 2  ;;  %v2344_v7 = vadd.f32 %v2343_v5, %v2342_v3 }
 0x186   : > { %v2291_v8 = vadd.f32 %v2290_v6, %v2289_v4  ;;  %v2345_v9 = vrot.slane %v2344_v7, 2 }
 0x188   : > { %v2292_v10 = vrot.slane %v2291_v8, 1  ;;  %v2346_v11 = vadd.f32 %v2345_v9, %v2344_v7 }
 0x18a   : > { %v2293_v12 = vadd.f32 %v2292_v10, %v2291_v8  ;;  %v2347_v13 = vrot.slane %v2346_v11, 1 }
 0x18c   : > { %2295 = vst.msk [vmem:[%s198_s12] sm:$0x1] %vm2294_vm3, %v2293_v12  ;;  %v2348_v14 = vadd.f32 %v2347_v13, %v2346_v11 }
 0x18e   : > { %2349 = vst.msk [vmem:[%s205_s29] sm:$0x1] %vm2294_vm3, %v2348_v14 }
 0x18f PF: > { %s14_s16 = sadd.s32 1, %s3329_s16   ;;  %s3925_s12 = smov %s3321_s14 }
 0x190   : > { %p11_p7 = scmp.ge.s32.totalorder %s14_s16, 6   ;;  %s3926_s13 = smov %s3325_s15 }
 0x191   : > { %s3927_s14 = smov %s3930_s17  ;;  %s3928_s15 = smov %s3934_s18 }
 0x192   :  { %13 = sbr.rel (!%p11_p7) target bundleno = 3 (0x3), region = 81 }

// kernel: acblock_forward.3
= control target key start
LH: loop header
LB: loop body
LE: loop exit
PB: predicated region body
PF: predicated region fallthrough
CT: control target
= control target key end

     0   :  { %s3268_s12 = smov 0   ;;  %s3270_s13 = smov 0   ;;  %s3857_s0 = inlined_call_operand.vmem [shape: f32[2,18,18,4], index: 0, kind: input, shape index: {}]   ;;  %s3858_s1 = inlined_call_operand.vmem [shape: f32[9,4,4], index: 1, kind: input, shape index: {}]   ;;  %s3859_s2 = inlined_call_operand.vmem [shape: f32[1,4], index: 2, kind: input, shape index: {}]   ;;  %s3860_s3 = inlined_call_operand.vmem [shape: f32[2,256,4], index: 3, kind: output, shape index: {}]  }
   0x1   :  { %s3272_s14 = smov 0   ;;  %s3274_s15 = smov 0  }
   0x2   :  { %s3276_s16 = smov 0  }
   0x3 LB: > { %s22_s17 = sadd.s32 1, %s3238_s14  ;;  %s25_s18 = sadd.s32 1, %s3242_s15  ;;  %s3246_s16 = sphi %s3276_s16, %s13_s16   ;;  %s3242_s15 = sphi %s3274_s15, %s3864_s15   ;;  %s3238_s14 = sphi %s3272_s14, %s3863_s14   ;;  %s3234_s13 = sphi %s3270_s13, %s3862_s13   ;;  %s3230_s12 = sphi %s3268_s12, %s3861_s12  }
   0x4   : > { %p23_p0 = scmp.ge.s32.totalorder %s22_s17, 2  ;;  %p2379_p1 = scmp.ge.s32.totalorder %s3246_s16, 1 }
   0x5   : > { %p151_p2 = scmp.lt.s32.totalorder %s3246_s16, 5 }
   0x6   : > { %s3866_s17 = smov (%p23_p0, %s22_s17), 0  ;;  %s3868_s18 = smov (!%p23_p0, %s25_s18), %s3242_s15 }
   0x7   : > { %p152_p3 = pnand %p2379_p1, %p151_p2  ;;  %p27_p4 = scmp.ge.s32.totalorder %s3868_s18, 2 }
   0x8   : > { %v2386_v0 = vld [vmem:[%s3858_s1 + $0x4] sm:$0xf] (!%p152_p3)  ;;  %vm281_vm0 = vcmask (!%p152_p3), 1043456   ;;  %v3306_v1 = vld [vmem:[%s3858_s1 + $0x10] sm:$0xf] (!%p152_p3)  ;;  %p179_p5 = scmp.lt.s32.totalorder (!%p152_p3), %s3234_s13, 1 }
   0x9   : > { %s3870_s18 = smov (%p27_p4, %s3868_s18), 0  ;;  %155 = sbr.rel (%p152_p3) target bundleno = 381 (0x17d), region = 32 }
   0xa   : > { %2803 = vmatprep.subr.msk.mxu1 (!%p152_p3), %vm281_vm0, %v2386_v0  ;;  %2907 = vmatprep.subr.msk.mxu0 (!%p152_p3), %vm281_vm0, %v3306_v1  ;;  %v213_v2 = vld [vmem:[%s3858_s1] sm:$0xf] (!%p152_p3)  ;;  %v2525_v3 = vld [vmem:[%s3858_s1 + $0x14] sm:$0xf] (!%p152_p3)  ;;  %s2385_s27 = smul.u32 (!%p152_p3), 192, %s3230_s12  ;;  %vm232_vm1 = vcmask (!%p152_p3), 31744  }
   0xb   : > { %2804 = vmatpush3.msk.msra.mxu1 (!%p152_p3), %vm281_vm0, %v2386_v0  ;;  %2908 = vmatpush3.msk.msra.mxu0 (!%p152_p3), %vm281_vm0, %v3306_v1  ;;  %v2561_v9 = vld [vmem:[%s3858_s1 + $0x18] sm:$0xf] (!%p152_p3)  ;;  %v3348_v10 = vld [vmem:[%s3858_s1 + $0x8] sm:$0xf] (!%p152_p3)  ;;  %v3411_v20 = vld [vmem:[%s3858_s1 + $0x1c] sm:$0xf] (!%p152_p3) }
   0xc   : > { %2829 = vmatprep.subr.msk.mxu1 (!%p152_p3), %vm281_vm0, %v213_v2  ;;  %2933 = vmatprep.subr.msk.mxu0 (!%p152_p3), %vm281_vm0, %v2525_v3  ;;  %v2457_v37 = vld [vmem:[%s3858_s1 + $0xc] sm:$0xf] (!%p152_p3)  ;;  %v2629_v51 = vld [vmem:[%s3858_s1 + $0x20] sm:$0xf] (!%p152_p3)  ;;  %s2381_s23 = sshll.u32 (!%p152_p3), %s3230_s12, 4 }
   0xd   : > { %p187_p6 = scmp.lt.s32.totalorder (!%p152_p3), %s2381_s23, 31 }
  0x10   : > { %s3872_s13 = smov (!%p179_p5, %s3234_s13), 1  ;;  %s3874_s23 = smov (!%p187_p6, %s2381_s23), 31 }
  0x11   : > { %s3167_s28 = smul.u32 432, %s3872_s13  ;;  %s2382_s24 = sshll.u32 %s3872_s13, 5 }
  0x12   : > { %s190_s25 = sadd.s32 %s2382_s24, %s3874_s23 }
  0x13   : > { %s183_s4 = scalar_lea.vmem %s3857_s0, %s3167_s28  ;;  %s2383_s26 = sshll.u32 %s190_s25, 3 }
  0x14   : > { %s3329_s5 = scalar_lea.vmem %s183_s4, %s2385_s27  ;;  %s3792_s30 = scalar_lea.vmem %s3860_s3, %s2383_s26 }
  0x15   : > { %v214_v4 = vld [vmem:[%s3329_s5 + $0x1] sm:$0xff]  ;;  %v2475_v5 = vld [vmem:[%s3329_s5 + $0x19] sm:$0xff]  ;;  %v215_v6 = vld [vmem:[%s3329_s5 + $0x9] sm:$0xff] }
  0x16   : > { %2805 = vmatprep.mubr.msk.f32.mxu1 %vm232_vm1, %v214_v4  ;;  %2909 = vmatprep.mubr.msk.f32.mxu0 %vm232_vm1, %v2475_v5  ;;  %v2476_v7 = vld [vmem:[%s3329_s5 + $0x21] sm:$0xff]  ;;  %v3338_v8 = vld [vmem:[%s3329_s5 + $0x31] sm:$0xff]  ;;  %v3353_v11 = vld [vmem:[%s3329_s5 + $0x39] sm:$0xff] }
  0x17   : > { %2806 = vmatmul.mubr.msk.f32.vlgmr.msra.gmra.mrb[0].mxu1 %vm232_vm1, %v215_v6  ;;  %2910 = vmatmul.mubr.msk.f32.vlgmr.msra.gmra.mrb[0].mxu0 %vm232_vm1, %v2476_v7  ;;  %v3359_v12 = vld [vmem:[%s3329_s5 + $0x49] sm:$0xff]  ;;  %v3372_v13 = vld [vmem:[%s3329_s5 + $0x51] sm:$0xff]  ;;  %v3375_v14 = vld [vmem:[%s3329_s5 + $0x61] sm:$0xff] }
  0x18   : > { %2830 = vmatpush3.msk.msra.mxu1 %vm281_vm0, %v213_v2  ;;  %2934 = vmatpush3.msk.msra.mxu0 %vm281_vm0, %v2525_v3  ;;  %v3386_v15 = vld [vmem:[%s3329_s5 + $0x69] sm:$0xff]  ;;  %v3389_v16 = vld [vmem:[%s3329_s5 + $0x1a] sm:$0xff]  ;;  %v3406_v19 = vld [vmem:[%s3329_s5 + $0x32] sm:$0xff] }
  0x19   : > { %2808 = vmatprep.mubr.msk.f32.mxu1 %vm232_vm1, %v2475_v5  ;;  %2912 = vmatprep.mubr.msk.f32.mxu0 %vm232_vm1, %v3338_v8  ;;  %v3400_v17 = vld [vmem:[%s3329_s5 + $0x22] sm:$0xff]  ;;  %v3403_v18 = vld [vmem:[%s3329_s5 + $0x79] sm:$0xff]  ;;  %v3429_v23 = vld [vmem:[%s3329_s5 + $0x91] sm:$0xff] }
  0x1a   : > { %2959 = vmatprep.subr.msk.mxu0 %vm281_vm0, %v2561_v9  ;;  %2855 = vmatprep.subr.msk.mxu1 %vm281_vm0, %v3348_v10  ;;  %v3421_v21 = vld [vmem:[%s3329_s5 + $0x81] sm:$0xff]  ;;  %v3432_v24 = vld [vmem:[%s3329_s5 + $0x4a] sm:$0xff]  ;;  %v3445_v25 = vld [vmem:[%s3329_s5 + $0x99] sm:$0xff] }
  0x1b   : > { %2809 = vmatmul.mubr.msk.f32.gmra.mrb[2].mxu1 %vm232_vm1, %v2476_v7  ;;  %2913 = vmatmul.mubr.msk.f32.gmra.mrb[2].mxu0 %vm232_vm1, %v3353_v11  ;;  %v3424_v22 = vld [vmem:[%s3329_s5 + $0x3a] sm:$0xff]  ;;  %v3448_v26 = vld [vmem:[%s3329_s5 + $0x52] sm:$0xff]  ;;  %v3451_v27 = vld [vmem:[%s3329_s5 + $0xa9] sm:$0xff] }
  0x1c   : > { %2811 = vmatprep.mubr.msk.f32.mxu1 %vm232_vm1, %v3338_v8  ;;  %2915 = vmatprep.mubr.msk.f32.mxu0 %vm232_vm1, %v3359_v12  ;;  %v3454_v28 = vld [vmem:[%s3329_s5 + $0x62] sm:$0xff]  ;;  %v3465_v29 = vld [vmem:[%s3329_s5 + $0xb1] sm:$0xff]  ;;  %v3472_v32 = vld [vmem:[%s3329_s5 + $0x7a] sm:$0xff] }
  0x1d   : > { %v3468_v30 = vld [vmem:[%s3329_s5 + $0x6a] sm:$0xff]  ;;  %v197_v31 = vld [vmem:[%s3329_s5] sm:$0xff]  ;;  %v3486_v35 = vld [vmem:[%s3329_s5 + $0x18] sm:$0xff] }
  0x1e   : > { %v198_v33 = vld [vmem:[%s3329_s5 + $0x8] sm:$0xff]  ;;  %v3489_v36 = vld [vmem:[%s3329_s5 + $0x92] sm:$0xff]  ;;  %v3502_v38 = vld [vmem:[%s3329_s5 + $0x20] sm:$0xff] }
  0x1f   : > { %2812 = vmatmul.mubr.msk.f32.gmra.mrb[4].mxu1 %vm232_vm1, %v3353_v11  ;;  %2916 = vmatmul.mubr.msk.f32.gmra.mrb[4].mxu0 %vm232_vm1, %v3372_v13  ;;  %v3483_v34 = vld [vmem:[%s3329_s5 + $0x82] sm:$0xff]  ;;  %v3505_v39 = vld [vmem:[%s3329_s5 + $0x9a] sm:$0xff]  ;;  %v3510_v40 = vld [vmem:[%s3329_s5 + $0x30] sm:$0xff] }
  0x20   : > { %2814 = vmatprep.mubr.msk.f32.mxu1 %vm232_vm1, %v3359_v12  ;;  %2918 = vmatprep.mubr.msk.f32.mxu0 %vm232_vm1, %v3375_v14  ;;  %v3513_v41 = vld [vmem:[%s3329_s5 + $0xaa] sm:$0xff]  ;;  %v3525_v42 = vld [vmem:[%s3329_s5 + $0x38] sm:$0xff]  ;;  %v3534_v45 = vld [vmem:[%s3329_s5 + $0xc2] sm:$0xff] }
  0x21   : > { %v3528_v43 = vld [vmem:[%s3329_s5 + $0xb2] sm:$0xff]  ;;  %v3531_v44 = vld [vmem:[%s3329_s5 + $0x48] sm:$0xff]  ;;  %v3551_v48 = vld [vmem:[%s3329_s5 + $0x60] sm:$0xff] }
  0x22   : > { %v3545_v46 = vld [vmem:[%s3329_s5 + $0x50] sm:$0xff]  ;;  %v3562_v49 = vld [vmem:[%s3329_s5 + $0x68] sm:$0xff]  ;;  %v3565_v50 = vld [vmem:[%s3329_s5 + $0x78] sm:$0xff] }
  0x23   : > { %2815 = vmatmul.mubr.msk.f32.gmra.mrb[6].mxu1 %vm232_vm1, %v3372_v13  ;;  %2919 = vmatmul.mubr.msk.f32.gmra.mrb[6].mxu0 %vm232_vm1, %v3386_v15  ;;  %v3548_v47 = vld [vmem:[%s3329_s5 + $0xca] sm:$0xff]  ;;  %v3579_v52 = vld [vmem:[%s3329_s5 + $0x80] sm:$0xff]  ;;  %v3596_v54 = vld [vmem:[%s3329_s5 + $0x98] sm:$0xff] }
  0x24   : > { %2817 = vmatprep.mubr.msk.f32.mxu1 %vm232_vm1, %v3375_v14  ;;  %2935 = vmatprep.mubr.msk.f32.mxu0 %vm232_vm1, %v3389_v16  ;;  %v3584_v53 = vld [vmem:[%s3329_s5 + $0x90] sm:$0xff]  ;;  %v3599_v55 = vld [vmem:[%s3329_s5 + $0xa8] sm:$0xff]  ;;  %v3630_v59 = vld [vmem:[%s3329_s5 + $0xc0] sm:$0xff] }
  0x25   : > { %v3610_v56 = vld [vmem:[%s3329_s5 + $0xb0] sm:$0xff]  ;;  %v626_v57 = vld [vmem:[%s3329_s5 + $0x2] sm:$0xff]  ;;  %v2559_v61 = vld [vmem:[%s3329_s5 + $0xd8] sm:$0xff] }
  0x26   : > { %v627_v58 = vld [vmem:[%s3329_s5 + $0xa] sm:$0xff]  ;;  %v2560_v62 = vld [vmem:[%s3329_s5 + $0xe0] sm:$0xff] }
  0x27   : > { %2818 = vmatmul.mubr.msk.f32.gmra.mrb[8].mxu1 %vm232_vm1, %v3386_v15  ;;  %2936 = vmatmul.mubr.msk.f32.vlgmr.msra.gmra.mrb[0].mxu0 %vm232_vm1, %v3400_v17  ;;  %v2558_v60 = vld [vmem:[%s3329_s5 + $0xc8] sm:$0xff]  ;;  %v2627_v3 = vld [vmem:[%s3329_s5 + $0xda] sm:$0xff] }
  0x28   : > { %2960 = vmatpush3.msk.msra.mxu0 %vm281_vm0, %v2561_v9  ;;  %2820 = vmatprep.mubr.msk.f32.mxu1 %vm232_vm1, %v3403_v18  ;;  %v2591_v63 = vld [vmem:[%s3329_s5 + $0xc1] sm:$0xff]  ;;  %v2592_v0 = vld [vmem:[%s3329_s5 + $0xc9] sm:$0xff] }
  0x29   : > { %2938 = vmatprep.mubr.msk.f32.mxu0 %vm232_vm1, %v3406_v19  ;;  %2985 = vmatprep.subr.msk.mxu0 %vm281_vm0, %v3411_v20  ;;  %v2594_v2 = vld [vmem:[%s3329_s5 + $0xe1] sm:$0xff] }
  0x2a   : > { %v2628_v4 = vld [vmem:[%s3329_s5 + $0xe2] sm:$0xff] }
  0x2b   : > { %2821 = vmatmul.mubr.msk.f32.gmra.mrb[10].mxu1 %vm232_vm1, %v3421_v21  ;;  %2939 = vmatmul.mubr.msk.f32.gmra.mrb[2].mxu0 %vm232_vm1, %v3424_v22 }
  0x2c   : > { %2823 = vmatprep.mubr.msk.f32.mxu1 %vm232_vm1, %v3429_v23  ;;  %2941 = vmatprep.mubr.msk.f32.mxu0 %vm232_vm1, %v3432_v24 }
  0x2f   : > { %2824 = vmatmul.mubr.msk.f32.gmra.mrb[12].mxu1 %vm232_vm1, %v3445_v25  ;;  %2942 = vmatmul.mubr.msk.f32.gmra.mrb[4].mxu0 %vm232_vm1, %v3448_v26 }
  0x30   : > { %2826 = vmatprep.mubr.msk.f32.mxu1 %vm232_vm1, %v3451_v27  ;;  %2944 = vmatprep.mubr.msk.f32.mxu0 %vm232_vm1, %v3454_v28 }
  0x33   : > { %2827 = vmatmul.mubr.msk.f32.gmra.mrb[14].mxu1 %vm232_vm1, %v3465_v29  ;;  %2945 = vmatmul.mubr.msk.f32.gmra.mrb[6].mxu0 %vm232_vm1, %v3468_v30 }
  0x34   : > { %2831 = vmatprep.mubr.msk.f32.mxu1 %vm232_vm1, %v197_v31  ;;  %2947 = vmatprep.mubr.msk.f32.mxu0 %vm232_vm1, %v3472_v32 }
  0x37   : > { %2832 = vmatmul.mubr.msk.f32.vlgmr.msra.gmra.mrb[0].mxu1 %vm232_vm1, %v198_v33  ;;  %2948 = vmatmul.mubr.msk.f32.gmra.mrb[8].mxu0 %vm232_vm1, %v3483_v34 }
  0x38   : > { %2856 = vmatpush3.msk.msra.mxu1 %vm281_vm0, %v3348_v10  ;;  %2834 = vmatprep.mubr.msk.f32.mxu1 %vm232_vm1, %v3486_v35 }
  0x39   : > { %2950 = vmatprep.mubr.msk.f32.mxu0 %vm232_vm1, %v3489_v36  ;;  %2881 = vmatprep.subr.msk.mxu1 %vm281_vm0, %v2457_v37 }
  0x3b   : > { %2835 = vmatmul.mubr.msk.f32.gmra.mrb[2].mxu1 %vm232_vm1, %v3502_v38  ;;  %2951 = vmatmul.mubr.msk.f32.gmra.mrb[10].mxu0 %vm232_vm1, %v3505_v39 }
  0x3c   : > { %2837 = vmatprep.mubr.msk.f32.mxu1 %vm232_vm1, %v3510_v40  ;;  %2953 = vmatprep.mubr.msk.f32.mxu0 %vm232_vm1, %v3513_v41 }
  0x3f   : > { %2838 = vmatmul.mubr.msk.f32.gmra.mrb[4].mxu1 %vm232_vm1, %v3525_v42  ;;  %2954 = vmatmul.mubr.msk.f32.gmra.mrb[12].mxu0 %vm232_vm1, %v3528_v43 }
  0x40   : > { %2840 = vmatprep.mubr.msk.f32.mxu1 %vm232_vm1, %v3531_v44  ;;  %2956 = vmatprep.mubr.msk.f32.mxu0 %vm232_vm1, %v3534_v45 }
  0x43   : > { %2841 = vmatmul.mubr.msk.f32.gmra.mrb[6].mxu1 %vm232_vm1, %v3545_v46  ;;  %2957 = vmatmul.mubr.msk.f32.gmra.mrb[14].mxu0 %vm232_vm1, %v3548_v47 }
  0x44   : > { %2843 = vmatprep.mubr.msk.f32.mxu1 %vm232_vm1, %v3551_v48  ;;  %2961 = vmatprep.mubr.msk.f32.mxu0 %vm232_vm1, %v3510_v40 }
  0x47   : > { %2844 = vmatmul.mubr.msk.f32.gmra.mrb[8].mxu1 %vm232_vm1, %v3562_v49  ;;  %2962 = vmatmul.mubr.msk.f32.vlgmr.msra.gmra.mrb[0].mxu0 %vm232_vm1, %v3525_v42 }
  0x48   : > { %2986 = vmatpush3.msk.msra.mxu0 %vm281_vm0, %v3411_v20  ;;  %2846 = vmatprep.mubr.msk.f32.mxu1 %vm232_vm1, %v3565_v50 }
  0x49   : > { %2964 = vmatprep.mubr.msk.f32.mxu0 %vm232_vm1, %v3531_v44  ;;  %3011 = vmatprep.subr.msk.mxu0 %vm281_vm0, %v2629_v51 }
  0x4b   : > { %2847 = vmatmul.mubr.msk.f32.gmra.mrb[10].mxu1 %vm232_vm1, %v3579_v52  ;;  %2965 = vmatmul.mubr.msk.f32.gmra.mrb[2].mxu0 %vm232_vm1, %v3545_v46 }
  0x4c   : > { %2849 = vmatprep.mubr.msk.f32.mxu1 %vm232_vm1, %v3584_v53  ;;  %2967 = vmatprep.mubr.msk.f32.mxu0 %vm232_vm1, %v3551_v48 }
  0x4f   : > { %2850 = vmatmul.mubr.msk.f32.gmra.mrb[12].mxu1 %vm232_vm1, %v3596_v54  ;;  %2968 = vmatmul.mubr.msk.f32.gmra.mrb[4].mxu0 %vm232_vm1, %v3562_v49 }
  0x50   : > { %2852 = vmatprep.mubr.msk.f32.mxu1 %vm232_vm1, %v3599_v55  ;;  %2970 = vmatprep.mubr.msk.f32.mxu0 %vm232_vm1, %v3565_v50 }
  0x53   : > { %2853 = vmatmul.mubr.msk.f32.gmra.mrb[14].mxu1 %vm232_vm1, %v3610_v56  ;;  %2971 = vmatmul.mubr.msk.f32.gmra.mrb[6].mxu0 %vm232_vm1, %v3579_v52 }
  0x54   : > { %2857 = vmatprep.mubr.msk.f32.mxu1 %vm232_vm1, %v626_v57  ;;  %2973 = vmatprep.mubr.msk.f32.mxu0 %vm232_vm1, %v3584_v53 }
  0x57   : > { %2858 = vmatmul.mubr.msk.f32.vlgmr.msra.gmra.mrb[0].mxu1 %vm232_vm1, %v627_v58  ;;  %2974 = vmatmul.mubr.msk.f32.gmra.mrb[8].mxu0 %vm232_vm1, %v3596_v54 }
  0x58   : > { %2882 = vmatpush3.msk.msra.mxu1 %vm281_vm0, %v2457_v37  ;;  %2860 = vmatprep.mubr.msk.f32.mxu1 %vm232_vm1, %v3389_v16 }
  0x59   : > { %2976 = vmatprep.mubr.msk.f32.mxu0 %vm232_vm1, %v3599_v55  ;;  %3037 = vmatprep.subr.msk.mxu1 %vm281_vm0, %v3306_v1 }
  0x5b   : > { %2861 = vmatmul.mubr.msk.f32.gmra.mrb[2].mxu1 %vm232_vm1, %v3400_v17  ;;  %2977 = vmatmul.mubr.msk.f32.gmra.mrb[10].mxu0 %vm232_vm1, %v3610_v56 }
  0x5c   : > { %2863 = vmatprep.mubr.msk.f32.mxu1 %vm232_vm1, %v3406_v19  ;;  %2979 = vmatprep.mubr.msk.f32.mxu0 %vm232_vm1, %v3630_v59 }
  0x5f   : > { %2864 = vmatmul.mubr.msk.f32.gmra.mrb[4].mxu1 %vm232_vm1, %v3424_v22  ;;  %2980 = vmatmul.mubr.msk.f32.gmra.mrb[12].mxu0 %vm232_vm1, %v2558_v60 }
  0x60   : > { %2866 = vmatprep.mubr.msk.f32.mxu1 %vm232_vm1, %v3432_v24  ;;  %2982 = vmatprep.mubr.msk.f32.mxu0 %vm232_vm1, %v2559_v61 }
  0x63   : > { %2867 = vmatmul.mubr.msk.f32.gmra.mrb[6].mxu1 %vm232_vm1, %v3448_v26  ;;  %2983 = vmatmul.mubr.msk.f32.gmra.mrb[14].mxu0 %vm232_vm1, %v2560_v62 }
  0x64   : > { %2869 = vmatprep.mubr.msk.f32.mxu1 %vm232_vm1, %v3454_v28  ;;  %2987 = vmatprep.mubr.msk.f32.mxu0 %vm232_vm1, %v3338_v8 }
  0x67   : > { %2870 = vmatmul.mubr.msk.f32.gmra.mrb[8].mxu1 %vm232_vm1, %v3468_v30  ;;  %2988 = vmatmul.mubr.msk.f32.vlgmr.msra.gmra.mrb[0].mxu0 %vm232_vm1, %v3353_v11 }
  0x68   : > { %3012 = vmatpush3.msk.msra.mxu0 %vm281_vm0, %v2629_v51  ;;  %2872 = vmatprep.mubr.msk.f32.mxu1 %vm232_vm1, %v3472_v32 }
  0x69   : > { %2990 = vmatprep.mubr.msk.f32.mxu0 %vm232_vm1, %v3359_v12 }
  0x6b   : > { %2873 = vmatmul.mubr.msk.f32.gmra.mrb[10].mxu1 %vm232_vm1, %v3483_v34  ;;  %2991 = vmatmul.mubr.msk.f32.gmra.mrb[2].mxu0 %vm232_vm1, %v3372_v13 }
  0x6c   : > { %2875 = vmatprep.mubr.msk.f32.mxu1 %vm232_vm1, %v3489_v36  ;;  %2993 = vmatprep.mubr.msk.f32.mxu0 %vm232_vm1, %v3375_v14  ;;  %v3787_v14 = vld [vmem:[%s3859_s2] ss:$0 sm:$0xff] }
  0x6f   : > { %2876 = vmatmul.mubr.msk.f32.gmra.mrb[12].mxu1 %vm232_vm1, %v3505_v39  ;;  %2994 = vmatmul.mubr.msk.f32.gmra.mrb[4].mxu0 %vm232_vm1, %v3386_v15 }
  0x70   : > { %2878 = vmatprep.mubr.msk.f32.mxu1 %vm232_vm1, %v3513_v41  ;;  %2996 = vmatprep.mubr.msk.f32.mxu0 %vm232_vm1, %v3403_v18 }
  0x73   : > { %2879 = vmatmul.mubr.msk.f32.gmra.mrb[14].mxu1 %vm232_vm1, %v3528_v43  ;;  %2997 = vmatmul.mubr.msk.f32.gmra.mrb[6].mxu0 %vm232_vm1, %v3421_v21 }
  0x74   : > { %2883 = vmatprep.mubr.msk.f32.mxu1 %vm232_vm1, %v3486_v35  ;;  %2999 = vmatprep.mubr.msk.f32.mxu0 %vm232_vm1, %v3429_v23 }
  0x77   : > { %2884 = vmatmul.mubr.msk.f32.vlgmr.msra.gmra.mrb[0].mxu1 %vm232_vm1, %v3502_v38  ;;  %3000 = vmatmul.mubr.msk.f32.gmra.mrb[8].mxu0 %vm232_vm1, %v3445_v25 }
  0x78   : > { %3038 = vmatpush3.msk.msra.mxu1 %vm281_vm0, %v3306_v1  ;;  %2886 = vmatprep.mubr.msk.f32.mxu1 %vm232_vm1, %v3510_v40  ;;  %v2593_v1 = vld [vmem:[%s3329_s5 + $0xd9] sm:$0xff] }
  0x79   : > { %3002 = vmatprep.mubr.msk.f32.mxu0 %vm232_vm1, %v3451_v27 }
  0x7b   : > { %2887 = vmatmul.mubr.msk.f32.gmra.mrb[2].mxu1 %vm232_vm1, %v3525_v42  ;;  %3003 = vmatmul.mubr.msk.f32.gmra.mrb[10].mxu0 %vm232_vm1, %v3465_v29 }
  0x7c   : > { %2889 = vmatprep.mubr.msk.f32.mxu1 %vm232_vm1, %v3531_v44  ;;  %3005 = vmatprep.mubr.msk.f32.mxu0 %vm232_vm1, %v2591_v63 }
  0x7f   : > { %2890 = vmatmul.mubr.msk.f32.gmra.mrb[4].mxu1 %vm232_vm1, %v3545_v46  ;;  %3006 = vmatmul.mubr.msk.f32.gmra.mrb[12].mxu0 %vm232_vm1, %v2592_v0 }
  0x80   : > { %2892 = vmatprep.mubr.msk.f32.mxu1 %vm232_vm1, %v3551_v48  ;;  %3008 = vmatprep.mubr.msk.f32.mxu0 %vm232_vm1, %v2593_v1 }
  0x83   : > { %2893 = vmatmul.mubr.msk.f32.gmra.mrb[6].mxu1 %vm232_vm1, %v3562_v49  ;;  %3009 = vmatmul.mubr.msk.f32.gmra.mrb[14].mxu0 %vm232_vm1, %v2594_v2 }
  0x84   : > { %2895 = vmatprep.mubr.msk.f32.mxu1 %vm232_vm1, %v3565_v50  ;;  %3013 = vmatprep.mubr.msk.f32.mxu0 %vm232_vm1, %v3406_v19 }
  0x87   : > { %2896 = vmatmul.mubr.msk.f32.gmra.mrb[8].mxu1 %vm232_vm1, %v3579_v52  ;;  %3014 = vmatmul.mubr.msk.f32.vlgmr.msra.gmra.mrb[0].mxu0 %vm232_vm1, %v3424_v22 }
  0x88   : > { %2898 = vmatprep.mubr.msk.f32.mxu1 %vm232_vm1, %v3584_v53  ;;  %3016 = vmatprep.mubr.msk.f32.mxu0 %vm232_vm1, %v3432_v24 }
  0x8b   : > { %2899 = vmatmul.mubr.msk.f32.gmra.mrb[10].mxu1 %vm232_vm1, %v3596_v54  ;;  %3017 = vmatmul.mubr.msk.f32.gmra.mrb[2].mxu0 %vm232_vm1, %v3448_v26 }
  0x8c   : > { %2901 = vmatprep.mubr.msk.f32.mxu1 %vm232_vm1, %v3599_v55  ;;  %3019 = vmatprep.mubr.msk.f32.mxu0 %vm232_vm1, %v3454_v28 }
  0x8f   : > { %2902 = vmatmul.mubr.msk.f32.gmra.mrb[12].mxu1 %vm232_vm1, %v3610_v56  ;;  %3020 = vmatmul.mubr.msk.f32.gmra.mrb[4].mxu0 %vm232_vm1, %v3468_v30 }
  0x90   : > { %2904 = vmatprep.mubr.msk.f32.mxu1 %vm232_vm1, %v3630_v59  ;;  %3022 = vmatprep.mubr.msk.f32.mxu0 %vm232_vm1, %v3472_v32 }
  0x93   : > { %2905 = vmatmul.mubr.msk.f32.gmra.mrb[14].mxu1 %vm232_vm1, %v2558_v60  ;;  %3023 = vmatmul.mubr.msk.f32.gmra.mrb[6].mxu0 %vm232_vm1, %v3483_v34 }
  0x94   : > { %2921 = vmatprep.mubr.msk.f32.mxu1 %vm232_vm1, %v3403_v18  ;;  %3025 = vmatprep.mubr.msk.f32.mxu0 %vm232_vm1, %v3489_v36 }
  0x97   : > { %2922 = vmatmul.mubr.msk.f32.vlgmr.msra.gmra.mrb[8].mxu1 %vm232_vm1, %v3421_v21  ;;  %3026 = vmatmul.mubr.msk.f32.gmra.mrb[8].mxu0 %vm232_vm1, %v3505_v39 }
  0x98   : > { %2924 = vmatprep.mubr.msk.f32.mxu1 %vm232_vm1, %v3429_v23  ;;  %3028 = vmatprep.mubr.msk.f32.mxu0 %vm232_vm1, %v3513_v41 }
  0x9b   : > { %2925 = vmatmul.mubr.msk.f32.gmra.mrb[10].mxu1 %vm232_vm1, %v3445_v25  ;;  %3029 = vmatmul.mubr.msk.f32.gmra.mrb[10].mxu0 %vm232_vm1, %v3528_v43 }
  0x9c   : > { %2927 = vmatprep.mubr.msk.f32.mxu1 %vm232_vm1, %v3451_v27  ;;  %3031 = vmatprep.mubr.msk.f32.mxu0 %vm232_vm1, %v3534_v45 }
  0x9f   : > { %2928 = vmatmul.mubr.msk.f32.gmra.mrb[12].mxu1 %vm232_vm1, %v3465_v29  ;;  %3032 = vmatmul.mubr.msk.f32.gmra.mrb[12].mxu0 %vm232_vm1, %v3548_v47 }
  0xa0   : > { %2930 = vmatprep.mubr.msk.f32.mxu1 %vm232_vm1, %v2591_v63  ;;  %3034 = vmatprep.mubr.msk.f32.mxu0 %vm232_vm1, %v2627_v3 }
  0xa3   : > { %2931 = vmatmul.mubr.msk.f32.gmra.mrb[14].mxu1 %vm232_vm1, %v2592_v0  ;;  %3035 = vmatmul.mubr.msk.f32.gmra.mrb[14].mxu0 %vm232_vm1, %v2628_v4 }
 0x14a   : > { %v2885_v5 = vpop.f32.mrb[0].mxu1 }
 0x14b   : > { %v994_v6 = vpop.f32.mrb[1].mxu1 }
 0x14e   : > { %v2888_v7 = vpop.f32.mrb[2].mxu1 }
 0x14f   : > { %v1004_v8 = vpop.f32.mrb[3].mxu1 }
 0x152   : > { %v2891_v9 = vpop.f32.mrb[4].mxu1 }
 0x153   : > { %v1014_v10 = vpop.f32.mrb[5].mxu1 }
 0x156   : > { %v2894_v11 = vpop.f32.mrb[6].mxu1 }
 0x157   : > { %v1024_v12 = vpop.f32.mrb[7].mxu1 }
 0x15a   : > { %v3015_v13 = vpop.f32.mrb[0].mxu0 }
 0x15b   : > { %v3039_v15 = vadd.f32 %v3015_v13, %v2885_v5  ;;  %v2147_v16 = vpop.f32.mrb[1].mxu0 }
 0x15c   : > { %v3040_v17 = vadd.f32 %v2147_v16, %v994_v6 }
 0x15d   : > { %v2250_v18 = vadd.f32 %v3039_v15, %v3787_v14 }
 0x15e   : > { %v2249_v19 = vadd.f32 %v3040_v17, %v3787_v14  ;;  %v3018_v20 = vpop.f32.mrb[2].mxu0 }
 0x15f   : > { %2266 = vst.msk [vmem:[%s3792_s30 + $0x8] sm:$0xff] %vm232_vm1, %v2250_v18  ;;  %v3041_v21 = vadd.f32 %v3018_v20, %v2888_v7  ;;  %v2157_v22 = vpop.f32.mrb[3].mxu0 }
 0x160   : > { %2265 = vst.msk [vmem:[%s3792_s30] sm:$0xff] %vm232_vm1, %v2249_v19  ;;  %v3042_v23 = vadd.f32 %v2157_v22, %v1004_v8 }
 0x161   : > { %v2252_v24 = vadd.f32 %v3041_v21, %v3787_v14 }
 0x162   : > { %v2251_v25 = vadd.f32 %v3042_v23, %v3787_v14  ;;  %v3021_v26 = vpop.f32.mrb[4].mxu0 }
 0x163   : > { %2268 = vst.msk [vmem:[%s3792_s30 + $0x18] sm:$0xff] %vm232_vm1, %v2252_v24  ;;  %v3043_v27 = vadd.f32 %v3021_v26, %v2891_v9  ;;  %v2167_v28 = vpop.f32.mrb[5].mxu0 }
 0x164   : > { %2267 = vst.msk [vmem:[%s3792_s30 + $0x10] sm:$0xff] %vm232_vm1, %v2251_v25  ;;  %v3044_v29 = vadd.f32 %v2167_v28, %v1014_v10 }
 0x165   : > { %v2254_v30 = vadd.f32 %v3043_v27, %v3787_v14 }
 0x166   : > { %v2253_v31 = vadd.f32 %v3044_v29, %v3787_v14  ;;  %v3024_v32 = vpop.f32.mrb[6].mxu0 }
 0x167   : > { %2270 = vst.msk [vmem:[%s3792_s30 + $0x28] sm:$0xff] %vm232_vm1, %v2254_v30  ;;  %v3045_v33 = vadd.f32 %v3024_v32, %v2894_v11  ;;  %v2177_v34 = vpop.f32.mrb[7].mxu0 }
 0x168   : > { %2269 = vst.msk [vmem:[%s3792_s30 + $0x20] sm:$0xff] %vm232_vm1, %v2253_v31  ;;  %v3046_v35 = vadd.f32 %v2177_v34, %v1024_v12 }
 0x169   : > { %v2256_v36 = vadd.f32 %v3045_v33, %v3787_v14 }
 0x16a   : > { %v2255_v37 = vadd.f32 %v3046_v35, %v3787_v14  ;;  %v2923_v38 = vpop.f32.mrb[8].mxu1  ;;  %v3027_v39 = vpop.f32.mrb[8].mxu0 }
 0x16b   : > { %2272 = vst.msk [vmem:[%s3792_s30 + $0x38] sm:$0xff] %vm232_vm1, %v2256_v36  ;;  %v3047_v40 = vadd.f32 %v3027_v39, %v2923_v38  ;;  %v1264_v41 = vpop.f32.mrb[9].mxu1  ;;  %v2187_v42 = vpop.f32.mrb[9].mxu0 }
 0x16c   : > { %2271 = vst.msk [vmem:[%s3792_s30 + $0x30] sm:$0xff] %vm232_vm1, %v2255_v37  ;;  %v3048_v43 = vadd.f32 %v2187_v42, %v1264_v41 }
 0x16d   : > { %v2258_v44 = vadd.f32 %v3047_v40, %v3787_v14 }
 0x16e   : > { %v2257_v45 = vadd.f32 %v3048_v43, %v3787_v14  ;;  %v2926_v46 = vpop.f32.mrb[10].mxu1  ;;  %v3030_v47 = vpop.f32.mrb[10].mxu0 }
 0x16f   : > { %2274 = vst.msk [vmem:[%s3792_s30 + $0x48] sm:$0xff] %vm232_vm1, %v2258_v44  ;;  %v3049_v48 = vadd.f32 %v3030_v47, %v2926_v46  ;;  %v1274_v49 = vpop.f32.mrb[11].mxu1  ;;  %v2197_v50 = vpop.f32.mrb[11].mxu0 }
 0x170   : > { %2273 = vst.msk [vmem:[%s3792_s30 + $0x40] sm:$0xff] %vm232_vm1, %v2257_v45  ;;  %v3050_v51 = vadd.f32 %v2197_v50, %v1274_v49 }
 0x171   : > { %v2260_v52 = vadd.f32 %v3049_v48, %v3787_v14 }
 0x172   : > { %v2259_v53 = vadd.f32 %v3050_v51, %v3787_v14  ;;  %v2929_v54 = vpop.f32.mrb[12].mxu1  ;;  %v3033_v55 = vpop.f32.mrb[12].mxu0 }
 0x173   : > { %2276 = vst.msk [vmem:[%s3792_s30 + $0x58] sm:$0xff] %vm232_vm1, %v2260_v52  ;;  %v3051_v56 = vadd.f32 %v3033_v55, %v2929_v54  ;;  %v1284_v57 = vpop.f32.mrb[13].mxu1  ;;  %v2207_v58 = vpop.f32.mrb[13].mxu0 }
 0x174   : > { %2275 = vst.msk [vmem:[%s3792_s30 + $0x50] sm:$0xff] %vm232_vm1, %v2259_v53  ;;  %v3052_v59 = vadd.f32 %v2207_v58, %v1284_v57 }
 0x175   : > { %v2262_v60 = vadd.f32 %v3051_v56, %v3787_v14 }
 0x176   : > { %v2261_v61 = vadd.f32 %v3052_v59, %v3787_v14  ;;  %v2932_v62 = vpop.f32.mrb[14].mxu1  ;;  %v3036_v63 = vpop.f32.mrb[14].mxu0 }
 0x177   : > { %2278 = vst.msk [vmem:[%s3792_s30 + $0x68] sm:$0xff] %vm232_vm1, %v2262_v60  ;;  %v3053_v0 = vadd.f32 %v3036_v63, %v2932_v62  ;;  %v1294_v1 = vpop.f32.mrb[15].mxu1  ;;  %v2217_v2 = vpop.f32.mrb[15].mxu0 }
 0x178   : > { %2277 = vst.msk [vmem:[%s3792_s30 + $0x60] sm:$0xff] %vm232_vm1, %v2261_v61  ;;  %v3054_v3 = vadd.f32 %v2217_v2, %v1294_v1 }
 0x179   : > { %v2264_v4 = vadd.f32 %v3053_v0, %v3787_v14 }
 0x17a   : > { %v2263_v5 = vadd.f32 %v3054_v3, %v3787_v14 }
 0x17b   : > { %2280 = vst.msk [vmem:[%s3792_s30 + $0x78] sm:$0xff] %vm232_vm1, %v2264_v4 }
 0x17c   : > { %2279 = vst.msk [vmem:[%s3792_s30 + $0x70] sm:$0xff] %vm232_vm1, %v2263_v5 }
 0x17d PF: > { %s13_s16 = sadd.s32 1, %s3246_s16   ;;  %s3861_s12 = smov %s3238_s14 }
 0x17e   : > { %p10_p7 = scmp.ge.s32.totalorder %s13_s16, 6   ;;  %s3862_s13 = smov %s3242_s15 }
 0x17f   : > { %s3863_s14 = smov %s3866_s17  ;;  %s3864_s15 = smov %s3870_s18 }
 0x180   :  { %12 = sbr.rel (!%p10_p7) target bundleno = 3 (0x3), region = 73 }

</bundles_post_ra>
